<compile_context>
chip_gen: v5e
topology: v5e:2x2
jax: 0.10.0
libtpu: 0.0.40
codegen_flags: <defaults>
</compile_context>

<pallas_src>
import jax
import jax.numpy as jnp
from jax.experimental import pallas as pl
from jax.experimental.pallas import tpu as pltpu

IN1, H1, H2, OUT = 32 * 32, 512, 256, 10
PAD_OUT = 128                       # lane-dense final layer; slice [:, :OUT] outside
OFF1 = (IN1 - 1) / 2.0              # 511.5
OFF2 = (H1 - 1) / 2.0               # 255.5
OFF3 = (H2 - 1) / 2.0               # 127.5
NEG_BIG = -1e30                     # f32 only: kills padded lanes in the softmax (exp -> 0)
R0 = -1.0                           # Sobol(1) point 0 is 0.0 -> 2*0 - 1


def pick_dot_dtype():
    """Narrowest exact MXU dtype for the current TPU generation."""
    kind = jax.devices()[0].device_kind.lower()
    if "v7" in kind:
        return jnp.float8_e4m3fn      # v7x MXU: fp8, no integer path; 0/±1 exact
    if "v5" in kind or "v6" in kind:
        return jnp.int8               # v5e/v6e MXU int8 path; exact with i32 accum
    return jnp.bfloat16               # portable fallback


def unary_net_kernel(x_ref,
                     w1_ref, c1_ref,
                     w2_ref, c2_ref,
                     w3_ref, c3_ref,
                     pred_ref, out_ref):
    act_dtype = w1_ref.dtype
    acc_dtype = jnp.int32 if act_dtype == jnp.int8 else jnp.float32

    def unary_linear(h, w_ref, c_ref):
        # y = h @ W' + c'  (W' = 2*W_bin - 1, c' = b_bin + fan_in - colsum(W_bin) - offset)
        # == h@W + (1-h)@(1-W) + b - offset   bit-exactly (Winv == 1 - W).
        acc = jnp.dot(h, w_ref[...], preferred_element_type=acc_dtype)
        return acc.astype(jnp.float32) + c_ref[...]

    def threshold(y, dtype):
        # y is half-integer (never exactly 0); route bool -> f32 -> narrow dtype
        # (all exact for 0/1) to keep the cast on well-supported Mosaic paths.
        return (y > 0.0).astype(jnp.float32).astype(dtype)

    x = x_ref[...]                                   # (1, 1024) 0/1 bits, act_dtype

    # ---- fc1: UnaryLinear(1024 -> 512) --------------------------------------
    h1 = threshold(unary_linear(x, w1_ref, c1_ref), act_dtype)     # (1, 512)
    # fc1_relu (UnaryCompare, fresh state) == identity

    # ---- fc2: UnaryLinear(512 -> 256) ----------------------------------------
    h2 = threshold(unary_linear(h1, w2_ref, c2_ref), act_dtype)    # (1, 256)
    # fc2_relu (UnaryCompare, fresh state) == identity

    # ---- fc3: UnaryLinear(256 -> 10), padded to 128 lanes ---------------------
    # Padded W'/c' columns are zero, so padded lanes of h3 are exactly 0.
    h3 = threshold(unary_linear(h2, w3_ref, c3_ref), jnp.float32)  # (1, 128)

    # ---- ProgressivePrecision.Monitor (first call, bipolar) -------------------
    err = 2.0 * h3 - 1.0 - pred_ref[...]                           # (1, 128) f32
    # Mask padded lanes BEFORE max/exp/sum so they cannot leak into the normalizer.
    lane = jax.lax.broadcasted_iota(jnp.int32, err.shape, 1)
    err = jnp.where(lane < OUT, err, NEG_BIG)

    # ---- log_softmax over dim=1 -----------------------------------------------
    m = jnp.max(err, axis=-1, keepdims=True)
    z = err - m
    lse = jnp.log(jnp.sum(jnp.exp(z), axis=-1, keepdims=True))
    out_ref[...] = z - lse


def unary_net_forward(x, kparams, prediction):
    """x: (1, 1024) f32 unary bits; kparams: folded narrow-dtype weights; prediction: (1, 10)."""
    act_dtype = kparams["w1"].dtype
    x_cast = x.astype(act_dtype)                     # 0/1 exact in bf16/int8/fp8
    pred_pad = jnp.pad(prediction, ((0, 0), (0, PAD_OUT - OUT)))
    args = (x_cast,
            kparams["w1"], kparams["c1"],
            kparams["w2"], kparams["c2"],
            kparams["w3"], kparams["c3"],
            pred_pad)
    vmem = pltpu.MemorySpace.VMEM
    out = pl.pallas_call(
        unary_net_kernel,
        out_shape=jax.ShapeDtypeStruct((1, PAD_OUT), jnp.float32),
        in_specs=[pl.BlockSpec(memory_space=vmem) for _ in args],
        out_specs=pl.BlockSpec(memory_space=vmem),
    )(*args)
    return out[:, :OUT]


def make_model_weights(key):
    """Deterministic synthetic float weights of the underlying binary 'Net'."""
    ks = jax.random.split(key, 6)

    def layer(kw, kb, fan_in, fan_out):
        w = jax.random.uniform(kw, (fan_out, fan_in), jnp.float32, -2.0, 2.0)
        b = jax.random.uniform(kb, (fan_out,), jnp.float32, -2.0, 2.0)
        return w, b

    w1, b1 = layer(ks[0], ks[1], IN1, H1)
    w2, b2 = layer(ks[2], ks[3], H1, H2)
    w3, b3 = layer(ks[4], ks[5], H2, OUT)
    return dict(w1=w1, b1=b1, w2=w2, b2=b2, w3=w3, b3=b3)


def binarize_for_kernel(model, dot_dtype):
    """Binarize exactly as UnaryLinear does on its first call (threshold rng[0] == -1),
    fold kernel_inv (== 1 - kernel), the ±1 activation transform, the row-sum term,
    the bias and the (fan_in-1)/2 offset into W' (±1, stored transposed (in,out) in
    dot_dtype) and one f32 constant c' per layer; pad layer 3 to 128 output lanes."""

    def layer(w, b, off, pad_to=None):
        w_bin = (w > R0).astype(jnp.float32).T                     # (in, out), 0/1
        b_bin = (b > R0).astype(jnp.float32).reshape(1, -1)
        fan_in = w_bin.shape[0]
        w_pm = 2.0 * w_bin - 1.0                                   # ±1
        c = b_bin + fan_in - jnp.sum(w_bin, axis=0, keepdims=True) - off   # f32, half-integer
        if pad_to is not None:
            w_pm = jnp.pad(w_pm, ((0, 0), (0, pad_to - w_pm.shape[1])))
            c = jnp.pad(c, ((0, 0), (0, pad_to - c.shape[1])))
        return w_pm.astype(dot_dtype), c                           # ±1/0 exact in narrow dtype

    w1, c1 = layer(model["w1"], model["b1"], OFF1)
    w2, c2 = layer(model["w2"], model["b2"], OFF2)
    w3, c3 = layer(model["w3"], model["b3"], OFF3, pad_to=PAD_OUT)
    return dict(w1=w1, c1=c1, w2=w2, c2=c2, w3=w3, c3=c3)


def reference_forward(x, model, prediction):
    """Plain-JAX reference of the original (explicit kernel + kernel_inv) semantics."""

    def lin(h, w, b, off):
        W = (w > R0).astype(jnp.float32)                           # (out, in)
        Wi = (w <= R0).astype(jnp.float32)
        bb = (b > R0).astype(jnp.float32)
        y = h @ W.T + (1.0 - h) @ Wi.T + bb
        return (y - off > 0.0).astype(jnp.float32)

    h1 = lin(x, model["w1"], model["b1"], OFF1)
    h2 = lin(h1, model["w2"], model["b2"], OFF2)
    h3 = lin(h2, model["w3"], model["b3"], OFF3)
    err = 2.0 * h3 - 1.0 - prediction
    return jax.nn.log_softmax(err, axis=1)


if __name__ == "__main__":
    key = jax.random.PRNGKey(0)
    k_x, k_pred, k_params = jax.random.split(key, 3)

    # unary (bit-stream) input, batch = 1 (module's (1, out) accumulators force it)
    x = (jax.random.uniform(k_x, (1, IN1)) > 0.5).astype(jnp.float32)
    # "prediction" target passed to ProgressivePrecision
    prediction = jax.random.uniform(k_pred, (1, OUT), jnp.float32, -1.0, 1.0)

    model = make_model_weights(k_params)

    dot_dtype = pick_dot_dtype()
    try:
        kparams = binarize_for_kernel(model, dot_dtype)
        out = jax.block_until_ready(unary_net_forward(x, kparams, prediction))
    except Exception:
        if dot_dtype == jnp.bfloat16:
            raise
        # Conservative fallback if this generation rejects the narrow MXU dtype.
        kparams = binarize_for_kernel(model, jnp.bfloat16)
        out = jax.block_until_ready(unary_net_forward(x, kparams, prediction))

    ref = reference_forward(x, model, prediction)
    assert out.shape == (1, OUT)
    assert jnp.allclose(out, ref, atol=1e-5), (out, ref)

    print("KERNEL_OK")
</pallas_src>

<mosaic_0001>
module attributes {stable_mosaic.version = 11 : i64} {
  func.func @unary_net_kernel(%arg0: memref<1x1024xbf16, #tpu.memory_space<vmem>>, %arg1: memref<1024x512xbf16, #tpu.memory_space<vmem>>, %arg2: memref<1x512xf32, #tpu.memory_space<vmem>>, %arg3: memref<512x256xbf16, #tpu.memory_space<vmem>>, %arg4: memref<1x256xf32, #tpu.memory_space<vmem>>, %arg5: memref<256x128xbf16, #tpu.memory_space<vmem>>, %arg6: memref<1x128xf32, #tpu.memory_space<vmem>>, %arg7: memref<1x128xf32, #tpu.memory_space<vmem>>, %arg8: memref<1x128xf32, #tpu.memory_space<vmem>>) attributes {dimension_semantics = [], scalar_prefetch = 0 : i64, scratch_operands = 0 : i64, tpu.core_type = #tpu.core_type<tc>} {
    %c0 = arith.constant 0 : index
    %c0_0 = arith.constant 0 : index
    %0 = vector.load %arg0[%c0, %c0_0] : memref<1x1024xbf16, #tpu.memory_space<vmem>>, vector<1x1024xbf16>
    %c0_1 = arith.constant 0 : index
    %c0_2 = arith.constant 0 : index
    %1 = vector.load %arg1[%c0_1, %c0_2] : memref<1024x512xbf16, #tpu.memory_space<vmem>>, vector<1024x512xbf16>
    %cst = arith.constant dense<0.000000e+00> : vector<1x512xf32>
    %2 = tpu.matmul %0, %1, %cst {dimension_numbers = #tpu.dot_dimension_numbers<[1], [0], [0], [1], [0, 0, 1, 1], [], []>} : vector<1x1024xbf16>, vector<1024x512xbf16>, vector<1x512xf32> -> vector<1x512xf32>
    %c0_3 = arith.constant 0 : index
    %c0_4 = arith.constant 0 : index
    %3 = vector.load %arg2[%c0_3, %c0_4] : memref<1x512xf32, #tpu.memory_space<vmem>>, vector<1x512xf32>
    %4 = arith.addf %2, %3 : vector<1x512xf32>
    %cst_5 = arith.constant 0.000000e+00 : f32
    %5 = vector.broadcast %cst_5 : f32 to vector<1x512xf32>
    %6 = arith.cmpf ogt, %4, %5 : vector<1x512xf32>
    %7 = arith.extui %6 : vector<1x512xi1> to vector<1x512xi32>
    %8 = arith.sitofp %7 : vector<1x512xi32> to vector<1x512xf32>
    %9 = arith.truncf %8 : vector<1x512xf32> to vector<1x512xbf16>
    %c0_6 = arith.constant 0 : index
    %c0_7 = arith.constant 0 : index
    %10 = vector.load %arg3[%c0_6, %c0_7] : memref<512x256xbf16, #tpu.memory_space<vmem>>, vector<512x256xbf16>
    %cst_8 = arith.constant dense<0.000000e+00> : vector<1x256xf32>
    %11 = tpu.matmul %9, %10, %cst_8 {dimension_numbers = #tpu.dot_dimension_numbers<[1], [0], [0], [1], [0, 0, 1, 1], [], []>} : vector<1x512xbf16>, vector<512x256xbf16>, vector<1x256xf32> -> vector<1x256xf32>
    %c0_9 = arith.constant 0 : index
    %c0_10 = arith.constant 0 : index
    %12 = vector.load %arg4[%c0_9, %c0_10] : memref<1x256xf32, #tpu.memory_space<vmem>>, vector<1x256xf32>
    %13 = arith.addf %11, %12 : vector<1x256xf32>
    %cst_11 = arith.constant 0.000000e+00 : f32
    %14 = vector.broadcast %cst_11 : f32 to vector<1x256xf32>
    %15 = arith.cmpf ogt, %13, %14 : vector<1x256xf32>
    %16 = arith.extui %15 : vector<1x256xi1> to vector<1x256xi32>
    %17 = arith.sitofp %16 : vector<1x256xi32> to vector<1x256xf32>
    %18 = arith.truncf %17 : vector<1x256xf32> to vector<1x256xbf16>
    %c0_12 = arith.constant 0 : index
    %c0_13 = arith.constant 0 : index
    %19 = vector.load %arg5[%c0_12, %c0_13] : memref<256x128xbf16, #tpu.memory_space<vmem>>, vector<256x128xbf16>
    %cst_14 = arith.constant dense<0.000000e+00> : vector<1x128xf32>
    %20 = tpu.matmul %18, %19, %cst_14 {dimension_numbers = #tpu.dot_dimension_numbers<[1], [0], [0], [1], [0, 0, 1, 1], [], []>} : vector<1x256xbf16>, vector<256x128xbf16>, vector<1x128xf32> -> vector<1x128xf32>
    %c0_15 = arith.constant 0 : index
    %c0_16 = arith.constant 0 : index
    %21 = vector.load %arg6[%c0_15, %c0_16] : memref<1x128xf32, #tpu.memory_space<vmem>>, vector<1x128xf32>
    %22 = arith.addf %20, %21 : vector<1x128xf32>
    %cst_17 = arith.constant 0.000000e+00 : f32
    %23 = vector.broadcast %cst_17 : f32 to vector<1x128xf32>
    %24 = arith.cmpf ogt, %22, %23 : vector<1x128xf32>
    %25 = arith.extui %24 : vector<1x128xi1> to vector<1x128xi32>
    %26 = arith.sitofp %25 : vector<1x128xi32> to vector<1x128xf32>
    %cst_18 = arith.constant 2.000000e+00 : f32
    %27 = vector.broadcast %cst_18 : f32 to vector<1x128xf32>
    %28 = arith.mulf %27, %26 : vector<1x128xf32>
    %cst_19 = arith.constant 1.000000e+00 : f32
    %29 = vector.broadcast %cst_19 : f32 to vector<1x128xf32>
    %30 = arith.subf %28, %29 : vector<1x128xf32>
    %c0_20 = arith.constant 0 : index
    %c0_21 = arith.constant 0 : index
    %31 = vector.load %arg7[%c0_20, %c0_21] : memref<1x128xf32, #tpu.memory_space<vmem>>, vector<1x128xf32>
    %32 = arith.subf %30, %31 : vector<1x128xf32>
    %33 = tpu.iota {dimensions = array<i32: 1>} : vector<1x128xi32>
    %c10_i32 = arith.constant 10 : i32
    %34 = vector.broadcast %c10_i32 : i32 to vector<1x128xi32>
    %35 = arith.cmpi slt, %33, %34 : vector<1x128xi32>
    %cst_22 = arith.constant -1.000000e+30 : f32
    %36 = vector.broadcast %cst_22 : f32 to vector<1x128xf32>
    %37 = arith.select %35, %32, %36 : vector<1x128xi1>, vector<1x128xf32>
    %cst_23 = arith.constant dense<0xFF800000> : vector<1xf32>
    %38 = vector.multi_reduction <maximumf>, %37, %cst_23 [1] : vector<1x128xf32> to vector<1xf32>
    %39 = vector.shape_cast %38 : vector<1xf32> to vector<1x1xf32>
    %40 = vector.broadcast %39 : vector<1x1xf32> to vector<1x128xf32>
    %41 = arith.subf %37, %40 : vector<1x128xf32>
    %42 = math.exp %41 : vector<1x128xf32>
    %cst_24 = arith.constant dense<0.000000e+00> : vector<1xf32>
    %43 = vector.multi_reduction <add>, %42, %cst_24 [1] : vector<1x128xf32> to vector<1xf32>
    %44 = vector.shape_cast %43 : vector<1xf32> to vector<1x1xf32>
    %45 = math.log %44 : vector<1x1xf32>
    %46 = vector.broadcast %45 : vector<1x1xf32> to vector<1x128xf32>
    %47 = arith.subf %41, %46 : vector<1x128xf32>
    %c0_25 = arith.constant 0 : index
    %c0_26 = arith.constant 0 : index
    %48 = vector.load %arg8[%c0_25, %c0_26] : memref<1x128xf32, #tpu.memory_space<vmem>>, vector<1x128xf32>
    tpu.vector_store %arg8[%c0_25, %c0_26], %47 {strides = array<i32>} : memref<1x128xf32, #tpu.memory_space<vmem>>, vector<1x128xf32>,
    return
  }
}

</mosaic_0001>

<bundles_post_ra>
// kernel: tpu_custom_call.1
= control target key start
LH: loop header
LB: loop body
LE: loop exit
PB: predicated region body
PF: predicated region fallthrough
CT: control target
= control target key end

     0   :  { %13 = vsyncpa [#allocation3], 0  ;;  %s4884_s0 = inlined_call_operand.hbm [shape: bf16[1,1024], index: 0, kind: input, shape index: {}]   ;;  %s4885_s1 = inlined_call_operand.hbm [shape: bf16[1024,512], index: 1, kind: input, shape index: {}]   ;;  %s4886_s2 = inlined_call_operand.hbm [shape: f32[1,512], index: 2, kind: input, shape index: {}]   ;;  %s4887_s3 = inlined_call_operand.hbm [shape: bf16[512,256], index: 3, kind: input, shape index: {}]   ;;  %s4888_s4 = inlined_call_operand.vmem [shape: f32[1,256], index: 4, kind: input, shape index: {}]   ;;  %s4889_s5 = inlined_call_operand.hbm [shape: bf16[256,128], index: 5, kind: input, shape index: {}]   ;;  %s4890_s6 = inlined_call_operand.vmem [shape: f32[1,128], index: 6, kind: input, shape index: {}]   ;;  %s4891_s7 = inlined_call_operand.vmem [shape: f32[1,128], index: 7, kind: input, shape index: {}]   ;;  %s4892_s8 = inlined_call_operand.hbm [shape: f32[1,128], index: 8, kind: output, shape index: {}]  }
   0x1   :  { %14 = vsyncpa [#allocation6], 0 }
   0x2   :  { %15 = vsyncpa [#allocation9], 0  ;;  %s32_s29 = sshll.u32 %s4885_s1, 4  ;;  %s33_s29 = int_to_ptr.hbm [resolvable:$true] %s32_s29 }
   0x3   :  { %16 = vsyncpa [#allocation4], 0  ;;  %s4689_s30 = smov [#allocation5]   ;;  %s56_s12 = sshll.u32 %s4887_s3, 4  ;;  %s57_s12 = int_to_ptr.hbm [resolvable:$true] %s56_s12 }
   0x4   :  { %s34_s9 = sshll.u32 %s4689_s30, 4  ;;  %s4690_s13 = smov 256   ;;  %s35_s9 = int_to_ptr.vmem [resolvable:$true] %s34_s9 }
   0x5   :  { %s4691_s14 = smov 16   ;;  %s4692_s15 = smov [#allocation8]  }
   0x6   :  { %40 = dma.hbm_to_vmem [thread:$0]  %s33_s29, 32768, %s35_s9, [#allocation6], %s4690_s13, %s4690_s13, %s4691_s14  }
   0x7   :  { %s58_s16 = sshll.u32 %s4692_s15, 4  ;;  %s4693_s17 = smov 128   ;;  %s59_s16 = int_to_ptr.vmem [resolvable:$true] %s58_s16 }
   0x8   :  { %s4694_s18 = smov 8   ;;  %s22_s20 = sshll.u32 %s4884_s0, 4  ;;  %s23_s20 = int_to_ptr.hbm [resolvable:$true] %s22_s20 }
   0x9   :  { %64 = dma.hbm_to_vmem [thread:$0]  %s57_s12, 8192, %s59_s16, [#allocation9], %s4693_s17, %s4693_s17, %s4694_s18  }
   0xa   :  { %s4695_s21 = smov [#allocation2]   ;;  %s46_s24 = sshll.u32 %s4886_s2, 4  ;;  %s47_s24 = int_to_ptr.hbm [resolvable:$true] %s46_s24 }
   0xb   :  { %s24_s22 = sshll.u32 %s4695_s21, 4  ;;  %s4696_s25 = smov [#allocation7]   ;;  %s25_s22 = int_to_ptr.vmem [resolvable:$true] %s24_s22 }
   0xc   :  { %27 = dma.hbm_to_vmem [thread:$0]  %s23_s20, 128, %s25_s22, [#allocation3]  }
   0xd   :  { %s48_s26 = sshll.u32 %s4696_s25, 4  ;;  %s71_s29 = sshll.u32 %s4889_s5, 4  ;;  %s49_s26 = int_to_ptr.vmem [resolvable:$true] %s48_s26  ;;  %s72_s29 = int_to_ptr.hbm [resolvable:$true] %s71_s29 }
   0xe   :  { %51 = dma.hbm_to_vmem [thread:$0]  %s47_s24, 64, %s49_s26, [#allocation6]  }
   0xf   :  { %s4697_s0 = smov [#allocation10]   ;;  %s4698_s9 = smov 64  }
  0x10   :  { %s73_s30 = sshll.u32 %s4697_s0, 4  ;;  %s4699_s10 = smov 4   ;;  %s74_s30 = int_to_ptr.vmem [resolvable:$true] %s73_s30 }
  0x11   :  { %79 = dma.hbm_to_vmem [thread:$0]  %s72_s29, 2048, %s74_s30, [#allocation9], %s4698_s9, %s4698_s9, %s4699_s10  }
  0x12   :  { %4681 = dma.done.wait [#allocation3], 128  }
  0x13   :  { %4682 = vsyncadd [#allocation3], 4294967168 }
  0x14   :  { %4683 = dma.done.wait [#allocation6], 32832  }
  0x15   :  { %4684 = vsyncadd [#allocation6], 4294934464 }
  0x16   :  { %4685 = dma.done.wait [#allocation9], 10240  }
  0x17   :  { %4686 = vsyncadd [#allocation9], 4294957056  ;;  %v2916_v0 = vld [vmem:[#allocation5 + $0xe0] sm:$0xf]  ;;  %v4204_v1 = vld [vmem:[#allocation5 + $0xec] sm:$0xf0] }
  0x18   :  { %v3044_v2 = vld [vmem:[#allocation5 + $0x1e0] sm:$0xf]  ;;  %v2917_v3 = vor.u32 %v4204_v1, %v2916_v0  ;;  %v4236_v4 = vld [vmem:[#allocation5 + $0x1ec] sm:$0xf0]  ;;  %vm2769_vm14 = vcmask 1040384   ;;  %s2790_s16 = sshll.u32 %s4892_s8, 4  ;;  %s2791_s16 = int_to_ptr.hbm [resolvable:$true] %s2790_s16 }
  0x19   :  { %v3172_v5 = vld [vmem:[#allocation5 + $0x2e0] sm:$0xf]  ;;  %v4268_v6 = vld [vmem:[#allocation5 + $0x2ec] sm:$0xf0]  ;;  %v3045_v7 = vor.u32 %v4236_v4, %v3044_v2 }
  0x1a   :  { %v3173_v8 = vor.u32 %v4268_v6, %v3172_v5  ;;  %v3300_v9 = vld [vmem:[#allocation5 + $0x3e0] sm:$0xf]  ;;  %v4300_v10 = vld [vmem:[#allocation5 + $0x3ec] sm:$0xf0]  ;;  %1669 = vmatpush.bf16.msra.mxu0 %v2917_v3 }
  0x1b   :  { %v2900_v11 = vld [vmem:[#allocation5 + $0xc0] sm:$0xf]  ;;  %v3301_v12 = vor.u32 %v4300_v10, %v3300_v9  ;;  %v4200_v13 = vld [vmem:[#allocation5 + $0xcc] sm:$0xf0]  ;;  %1682 = vmatpush.bf16.msra.mxu1 %v3045_v7 }
  0x1c   :  { %v3028_v14 = vld [vmem:[#allocation5 + $0x1c0] sm:$0xf]  ;;  %v4232_v15 = vld [vmem:[#allocation5 + $0x1cc] sm:$0xf0]  ;;  %1695 = vmatpush.bf16.msra.mxu2 %v3173_v8  ;;  %v2901_v16 = vor.u32 %v4200_v13, %v2900_v11 }
  0x1d   :  { %v3029_v17 = vor.u32 %v4232_v15, %v3028_v14  ;;  %v3156_v18 = vld [vmem:[#allocation5 + $0x2c0] sm:$0xf]  ;;  %v4264_v19 = vld [vmem:[#allocation5 + $0x2cc] sm:$0xf0]  ;;  %1708 = vmatpush.bf16.msra.mxu3 %v3301_v12 }
  0x1e   :  { %v3284_v20 = vld [vmem:[#allocation5 + $0x3c0] sm:$0xf]  ;;  %v3157_v21 = vor.u32 %v4264_v19, %v3156_v18  ;;  %v4296_v22 = vld [vmem:[#allocation5 + $0x3cc] sm:$0xf0]  ;;  %1670 = vmatpush.bf16.msra.mxu0 %v2901_v16 }
  0x1f   :  { %v2884_v23 = vld [vmem:[#allocation5 + $0xa0] sm:$0xf]  ;;  %v4196_v24 = vld [vmem:[#allocation5 + $0xac] sm:$0xf0]  ;;  %v3285_v25 = vor.u32 %v4296_v22, %v3284_v20  ;;  %1683 = vmatpush.bf16.msra.mxu1 %v3029_v17 }
  0x20   :  { %v3012_v26 = vld [vmem:[#allocation5 + $0x1a0] sm:$0xf]  ;;  %v4228_v27 = vld [vmem:[#allocation5 + $0x1ac] sm:$0xf0]  ;;  %v2885_v29 = vor.u32 %v4196_v24, %v2884_v23  ;;  %1696 = vmatpush.bf16.msra.mxu2 %v3157_v21 }
  0x21   :  { %v3140_v28 = vld [vmem:[#allocation5 + $0x2a0] sm:$0xf]  ;;  %v4260_v30 = vld [vmem:[#allocation5 + $0x2ac] sm:$0xf0]  ;;  %v3013_v33 = vor.u32 %v4228_v27, %v3012_v26  ;;  %1709 = vmatpush.bf16.msra.mxu3 %v3285_v25 }
  0x22   :  { %v3268_v31 = vld [vmem:[#allocation5 + $0x3a0] sm:$0xf]  ;;  %v4292_v32 = vld [vmem:[#allocation5 + $0x3ac] sm:$0xf0]  ;;  %v3141_v34 = vor.u32 %v4260_v30, %v3140_v28  ;;  %1671 = vmatpush.bf16.msra.mxu0 %v2885_v29 }
  0x23   :  { %v2868_v35 = vld [vmem:[#allocation5 + $0x80] sm:$0xf]  ;;  %v4192_v36 = vld [vmem:[#allocation5 + $0x8c] sm:$0xf0]  ;;  %v3269_v38 = vor.u32 %v4292_v32, %v3268_v31  ;;  %1684 = vmatpush.bf16.msra.mxu1 %v3013_v33 }
  0x24   :  { %v2996_v37 = vld [vmem:[#allocation5 + $0x180] sm:$0xf]  ;;  %v4224_v39 = vld [vmem:[#allocation5 + $0x18c] sm:$0xf0]  ;;  %v2869_v44 = vor.u32 %v4192_v36, %v2868_v35  ;;  %1697 = vmatpush.bf16.msra.mxu2 %v3141_v34 }
  0x25   :  { %v3124_v40 = vld [vmem:[#allocation5 + $0x280] sm:$0xf]  ;;  %v4256_v41 = vld [vmem:[#allocation5 + $0x28c] sm:$0xf0]  ;;  %v2997_v45 = vor.u32 %v4224_v39, %v2996_v37  ;;  %1710 = vmatpush.bf16.msra.mxu3 %v3269_v38 }
  0x26   :  { %v3252_v42 = vld [vmem:[#allocation5 + $0x380] sm:$0xf]  ;;  %v4288_v43 = vld [vmem:[#allocation5 + $0x38c] sm:$0xf0]  ;;  %v3125_v46 = vor.u32 %v4256_v41, %v3124_v40  ;;  %1672 = vmatpush.bf16.msra.mxu0 %v2869_v44 }
  0x27   :  { %v2852_v47 = vld [vmem:[#allocation5 + $0x60] sm:$0xf]  ;;  %v4188_v48 = vld [vmem:[#allocation5 + $0x6c] sm:$0xf0]  ;;  %v3253_v50 = vor.u32 %v4288_v43, %v3252_v42  ;;  %1685 = vmatpush.bf16.msra.mxu1 %v2997_v45 }
  0x28   :  { %v2980_v49 = vld [vmem:[#allocation5 + $0x160] sm:$0xf]  ;;  %v4220_v51 = vld [vmem:[#allocation5 + $0x16c] sm:$0xf0]  ;;  %v2853_v56 = vor.u32 %v4188_v48, %v2852_v47  ;;  %1698 = vmatpush.bf16.msra.mxu2 %v3125_v46 }
  0x29   :  { %v3108_v52 = vld [vmem:[#allocation5 + $0x260] sm:$0xf]  ;;  %v4252_v53 = vld [vmem:[#allocation5 + $0x26c] sm:$0xf0]  ;;  %v2981_v57 = vor.u32 %v4220_v51, %v2980_v49  ;;  %1711 = vmatpush.bf16.msra.mxu3 %v3253_v50 }
  0x2a   :  { %v3236_v54 = vld [vmem:[#allocation5 + $0x360] sm:$0xf]  ;;  %v4284_v55 = vld [vmem:[#allocation5 + $0x36c] sm:$0xf0]  ;;  %v3109_v58 = vor.u32 %v4252_v53, %v3108_v52  ;;  %1673 = vmatpush.bf16.msra.mxu0 %v2853_v56 }
  0x2b   :  { %v2836_v59 = vld [vmem:[#allocation5 + $0x40] sm:$0xf]  ;;  %v4184_v60 = vld [vmem:[#allocation5 + $0x4c] sm:$0xf0]  ;;  %v3237_v62 = vor.u32 %v4284_v55, %v3236_v54  ;;  %1686 = vmatpush.bf16.msra.mxu1 %v2981_v57 }
  0x2c   :  { %v2964_v61 = vld [vmem:[#allocation5 + $0x140] sm:$0xf]  ;;  %v4216_v63 = vld [vmem:[#allocation5 + $0x14c] sm:$0xf0]  ;;  %v2837_v4 = vor.u32 %v4184_v60, %v2836_v59  ;;  %1699 = vmatpush.bf16.msra.mxu2 %v3109_v58 }
  0x2d   :  { %v3092_v0 = vld [vmem:[#allocation5 + $0x240] sm:$0xf]  ;;  %v4248_v1 = vld [vmem:[#allocation5 + $0x24c] sm:$0xf0]  ;;  %v2965_v5 = vor.u32 %v4216_v63, %v2964_v61  ;;  %1712 = vmatpush.bf16.msra.mxu3 %v3237_v62 }
  0x2e   :  { %v3220_v2 = vld [vmem:[#allocation5 + $0x340] sm:$0xf]  ;;  %v4280_v3 = vld [vmem:[#allocation5 + $0x34c] sm:$0xf0]  ;;  %v3093_v6 = vor.u32 %v4248_v1, %v3092_v0  ;;  %1674 = vmatpush.bf16.msra.mxu0 %v2837_v4 }
  0x2f   :  { %v2820_v7 = vld [vmem:[#allocation5 + $0x20] sm:$0xf]  ;;  %v4180_v8 = vld [vmem:[#allocation5 + $0x2c] sm:$0xf0]  ;;  %v3221_v10 = vor.u32 %v4280_v3, %v3220_v2  ;;  %1687 = vmatpush.bf16.msra.mxu1 %v2965_v5  ;;  %v104_v2 = vld [vmem:[#allocation2] sm:$0xff] }
  0x30   :  { %v2948_v9 = vld [vmem:[#allocation5 + $0x120] sm:$0xf]  ;;  %v4212_v11 = vld [vmem:[#allocation5 + $0x12c] sm:$0xf0]  ;;  %v2821_v16 = vor.u32 %v4180_v8, %v2820_v7  ;;  %1700 = vmatpush.bf16.msra.mxu2 %v3093_v6  ;;  %363 = vst [vmem:[#allocation1] ss:$9 sm:$0xff] %v104_v2 }
  0x31   :  { %v3076_v12 = vld [vmem:[#allocation5 + $0x220] sm:$0xf]  ;;  %v4244_v13 = vld [vmem:[#allocation5 + $0x22c] sm:$0xf0]  ;;  %v2949_v19 = vor.u32 %v4212_v11, %v2948_v9  ;;  %1713 = vmatpush.bf16.msra.mxu3 %v3221_v10  ;;  %v2918_v2 = vld [vmem:[#allocation5 + $0xf0] sm:$0xf0] }
  0x32   :  { %v3204_v14 = vld [vmem:[#allocation5 + $0x320] sm:$0xf]  ;;  %v4276_v15 = vld [vmem:[#allocation5 + $0x32c] sm:$0xf0]  ;;  %v3077_v20 = vor.u32 %v4244_v13, %v3076_v12  ;;  %1675 = vmatpush.bf16.msra.mxu0 %v2821_v16 }
  0x33   :  { %v2804_v17 = vld [vmem:[#allocation5] sm:$0xf]  ;;  %v4176_v18 = vld [vmem:[#allocation5 + $0xc] sm:$0xf0]  ;;  %v3205_v24 = vor.u32 %v4276_v15, %v3204_v14  ;;  %1688 = vmatpush.bf16.msra.mxu1 %v2949_v19 }
  0x34   :  { %v2932_v21 = vld [vmem:[#allocation5 + $0x100] sm:$0xf]  ;;  %v4208_v22 = vld [vmem:[#allocation5 + $0x10c] sm:$0xf0]  ;;  %v2805_v31 = vor.u32 %v4176_v18, %v2804_v17  ;;  %1701 = vmatpush.bf16.msra.mxu2 %v3077_v20 }
  0x35   :  { %v3060_v23 = vld [vmem:[#allocation5 + $0x200] sm:$0xf]  ;;  %v4240_v25 = vld [vmem:[#allocation5 + $0x20c] sm:$0xf0]  ;;  %v2933_v35 = vor.u32 %v4208_v22, %v2932_v21  ;;  %1714 = vmatpush.bf16.msra.mxu3 %v3205_v24 }
  0x36   :  { %v3188_v26 = vld [vmem:[#allocation5 + $0x300] sm:$0xf]  ;;  %v4272_v27 = vld [vmem:[#allocation5 + $0x30c] sm:$0xf0]  ;;  %v3061_v36 = vor.u32 %v4240_v25, %v3060_v23  ;;  %1676 = vmatpush.bf16.msra.mxu0 %v2805_v31 }
  0x37   :  { %v3428_v28 = vld [vmem:[#allocation5 + $0x4e0] sm:$0xf]  ;;  %v4332_v29 = vld [vmem:[#allocation5 + $0x4ec] sm:$0xf0]  ;;  %v3189_v39 = vor.u32 %v4272_v27, %v3188_v26  ;;  %1689 = vmatpush.bf16.msra.mxu1 %v2933_v35 }
  0x38   :  { %v3556_v30 = vld [vmem:[#allocation5 + $0x5e0] sm:$0xf]  ;;  %v4364_v32 = vld [vmem:[#allocation5 + $0x5ec] sm:$0xf0]  ;;  %v3429_v40 = vor.u32 %v4332_v29, %v3428_v28  ;;  %1702 = vmatpush.bf16.msra.mxu2 %v3061_v36 }
  0x39   :  { %v3684_v33 = vld [vmem:[#allocation5 + $0x6e0] sm:$0xf]  ;;  %v4396_v34 = vld [vmem:[#allocation5 + $0x6ec] sm:$0xf0]  ;;  %v3557_v41 = vor.u32 %v4364_v32, %v3556_v30  ;;  %1715 = vmatpush.bf16.msra.mxu3 %v3189_v39 }
  0x3a   :  { %v3812_v37 = vld [vmem:[#allocation5 + $0x7e0] sm:$0xf]  ;;  %v4428_v38 = vld [vmem:[#allocation5 + $0x7ec] sm:$0xf0]  ;;  %v3685_v42 = vor.u32 %v4396_v34, %v3684_v33  ;;  %1721 = vmatpush.bf16.msrb.mxu0 %v3429_v40 }
  0x3b   :  { %v3412_v43 = vld [vmem:[#allocation5 + $0x4c0] sm:$0xf]  ;;  %v4328_v44 = vld [vmem:[#allocation5 + $0x4cc] sm:$0xf0]  ;;  %v3813_v46 = vor.u32 %v4428_v38, %v3812_v37  ;;  %1734 = vmatpush.bf16.msrb.mxu1 %v3557_v41 }
  0x3c   :  { %v3540_v45 = vld [vmem:[#allocation5 + $0x5c0] sm:$0xf]  ;;  %v4360_v47 = vld [vmem:[#allocation5 + $0x5cc] sm:$0xf0]  ;;  %v3413_v52 = vor.u32 %v4328_v44, %v3412_v43  ;;  %1747 = vmatpush.bf16.msrb.mxu2 %v3685_v42 }
  0x3d   :  { %v3668_v48 = vld [vmem:[#allocation5 + $0x6c0] sm:$0xf]  ;;  %v4392_v49 = vld [vmem:[#allocation5 + $0x6cc] sm:$0xf0]  ;;  %v3541_v53 = vor.u32 %v4360_v47, %v3540_v45  ;;  %1760 = vmatpush.bf16.msrb.mxu3 %v3813_v46 }
  0x3e   :  { %v3796_v50 = vld [vmem:[#allocation5 + $0x7c0] sm:$0xf]  ;;  %v4424_v51 = vld [vmem:[#allocation5 + $0x7cc] sm:$0xf0]  ;;  %v3669_v54 = vor.u32 %v4392_v49, %v3668_v48  ;;  %1722 = vmatpush.bf16.msrb.mxu0 %v3413_v52 }
  0x3f   :  { %v3396_v55 = vld [vmem:[#allocation5 + $0x4a0] sm:$0xf]  ;;  %v4324_v56 = vld [vmem:[#allocation5 + $0x4ac] sm:$0xf0]  ;;  %v3797_v58 = vor.u32 %v4424_v51, %v3796_v50  ;;  %1735 = vmatpush.bf16.msrb.mxu1 %v3541_v53 }
  0x40   :  { %v3524_v57 = vld [vmem:[#allocation5 + $0x5a0] sm:$0xf]  ;;  %v4356_v59 = vld [vmem:[#allocation5 + $0x5ac] sm:$0xf0]  ;;  %v3397_v0 = vor.u32 %v4324_v56, %v3396_v55  ;;  %1748 = vmatpush.bf16.msrb.mxu2 %v3669_v54 }
  0x41   :  { %v3652_v60 = vld [vmem:[#allocation5 + $0x6a0] sm:$0xf]  ;;  %v4388_v61 = vld [vmem:[#allocation5 + $0x6ac] sm:$0xf0]  ;;  %v3525_v3 = vor.u32 %v4356_v59, %v3524_v57  ;;  %1761 = vmatpush.bf16.msrb.mxu3 %v3797_v58 }
  0x42   :  { %v3780_v62 = vld [vmem:[#allocation5 + $0x7a0] sm:$0xf]  ;;  %v4420_v63 = vld [vmem:[#allocation5 + $0x7ac] sm:$0xf0]  ;;  %v3653_v4 = vor.u32 %v4388_v61, %v3652_v60  ;;  %1723 = vmatpush.bf16.msrb.mxu0 %v3397_v0 }
  0x43   :  { %v3380_v1 = vld [vmem:[#allocation5 + $0x480] sm:$0xf]  ;;  %v4320_v5 = vld [vmem:[#allocation5 + $0x48c] sm:$0xf0]  ;;  %v3781_v7 = vor.u32 %v4420_v63, %v3780_v62  ;;  %1736 = vmatpush.bf16.msrb.mxu1 %v3525_v3  ;;  %v4234_v3 = vld [vmem:[#allocation5 + $0x1e4] sm:$0xf] }
  0x44   :  { %v3508_v6 = vld [vmem:[#allocation5 + $0x580] sm:$0xf]  ;;  %v4352_v8 = vld [vmem:[#allocation5 + $0x58c] sm:$0xf0]  ;;  %v3381_v13 = vor.u32 %v4320_v5, %v3380_v1  ;;  %1749 = vmatpush.bf16.msrb.mxu2 %v3653_v4  ;;  %v4202_v1 = vld [vmem:[#allocation5 + $0xe4] sm:$0xf] }
  0x45   :  { %v3636_v9 = vld [vmem:[#allocation5 + $0x680] sm:$0xf]  ;;  %v4384_v10 = vld [vmem:[#allocation5 + $0x68c] sm:$0xf0]  ;;  %v3509_v14 = vor.u32 %v4352_v8, %v3508_v6  ;;  %1762 = vmatpush.bf16.msrb.mxu3 %v3781_v7  ;;  %v3046_v5 = vld [vmem:[#allocation5 + $0x1f0] sm:$0xf0] }
  0x46   :  { %v3764_v11 = vld [vmem:[#allocation5 + $0x780] sm:$0xf]  ;;  %v4416_v12 = vld [vmem:[#allocation5 + $0x78c] sm:$0xf0]  ;;  %v3637_v15 = vor.u32 %v4384_v10, %v3636_v9  ;;  %1724 = vmatpush.bf16.msrb.mxu0 %v3381_v13  ;;  %v4266_v6 = vld [vmem:[#allocation5 + $0x2e4] sm:$0xf]  ;;  %v2921_v13 = vor.u32 %v4202_v1, %v2918_v2 }
  0x47   :  { %v3364_v16 = vld [vmem:[#allocation5 + $0x460] sm:$0xf]  ;;  %v4316_v17 = vld [vmem:[#allocation5 + $0x46c] sm:$0xf0]  ;;  %v3765_v19 = vor.u32 %v4416_v12, %v3764_v11  ;;  %1737 = vmatpush.bf16.msrb.mxu1 %v3509_v14  ;;  %v3174_v7 = vld [vmem:[#allocation5 + $0x2f0] sm:$0xf0]  ;;  %v3049_v14 = vor.u32 %v4234_v3, %v3046_v5 }
  0x48   :  { %v3492_v18 = vld [vmem:[#allocation5 + $0x560] sm:$0xf]  ;;  %v4348_v20 = vld [vmem:[#allocation5 + $0x56c] sm:$0xf0]  ;;  %v3365_v26 = vor.u32 %v4316_v17, %v3364_v16  ;;  %1750 = vmatpush.bf16.msrb.mxu2 %v3637_v15  ;;  %v4298_v10 = vld [vmem:[#allocation5 + $0x3e4] sm:$0xf]  ;;  %v3177_v15 = vor.u32 %v4266_v6, %v3174_v7 }
  0x49   :  { %v3620_v21 = vld [vmem:[#allocation5 + $0x660] sm:$0xf]  ;;  %v4380_v22 = vld [vmem:[#allocation5 + $0x66c] sm:$0xf0]  ;;  %v3493_v30 = vor.u32 %v4348_v20, %v3492_v18  ;;  %1763 = vmatpush.bf16.msrb.mxu3 %v3765_v19  ;;  %v3302_v11 = vld [vmem:[#allocation5 + $0x3f0] sm:$0xf0] }
  0x4a   :  { %v3748_v23 = vld [vmem:[#allocation5 + $0x760] sm:$0xf]  ;;  %v4412_v24 = vld [vmem:[#allocation5 + $0x76c] sm:$0xf0]  ;;  %v3621_v31 = vor.u32 %v4380_v22, %v3620_v21  ;;  %1725 = vmatpush.bf16.msrb.mxu0 %v3365_v26  ;;  %v4198_v16 = vld [vmem:[#allocation5 + $0xc4] sm:$0xf]  ;;  %v3305_v19 = vor.u32 %v4298_v10, %v3302_v11 }
  0x4b   :  { %v3348_v25 = vld [vmem:[#allocation5 + $0x440] sm:$0xf]  ;;  %v4765_v28 = vld [vmem:[#allocation1] sm:$0xff]  ;;  %v3749_v35 = vor.u32 %v4412_v24, %v3748_v23  ;;  %1738 = vmatpush.bf16.msrb.mxu1 %v3493_v30  ;;  %v4230_v18 = vld [vmem:[#allocation5 + $0x1c4] sm:$0xf] }
  0x4c   :  { %v4763_v27 = vld [vmem:[#allocation1 + $0x12] sm:$0xff]  ;;  %v4767_v29 = vld [vmem:[#allocation1 + $0x1b] sm:$0xff]  ;;  %v4769_v34 = vld [vmem:[#allocation1 + $0x9] sm:$0xff]  ;;  %1677 = vmatmul.bf16.vlgmr.msra.gmra.mxu0 %v4765_v28  ;;  %1751 = vmatpush.bf16.msrb.mxu2 %v3621_v31 }
  0x4d   :  { %v4312_v32 = vld [vmem:[#allocation5 + $0x44c] sm:$0xf0]  ;;  %v3476_v33 = vld [vmem:[#allocation5 + $0x540] sm:$0xf]  ;;  %1703 = vmatmul.bf16.vlgmr.msra.gmra.mxu2 %v4763_v27  ;;  %1716 = vmatmul.bf16.vlgmr.msra.gmra.mxu3 %v4767_v29  ;;  %v2902_v17 = vld [vmem:[#allocation5 + $0xd0] sm:$0xf0] }
  0x4e   :  { %v4344_v36 = vld [vmem:[#allocation5 + $0x54c] sm:$0xf0]  ;;  %v3604_v37 = vld [vmem:[#allocation5 + $0x640] sm:$0xf]  ;;  %v3349_v41 = vor.u32 %v4312_v32, %v3348_v25  ;;  %1690 = vmatmul.bf16.vlgmr.msra.gmra.mxu1 %v4769_v34  ;;  %1764 = vmatpush.bf16.msrb.mxu3 %v3749_v35  ;;  %v3030_v20 = vld [vmem:[#allocation5 + $0x1d0] sm:$0xf0]  ;;  %v2905_v26 = vor.u32 %v4198_v16, %v2902_v17 }
  0x4f   :  { %v4376_v38 = vld [vmem:[#allocation5 + $0x64c] sm:$0xf0]  ;;  %v3732_v39 = vld [vmem:[#allocation5 + $0x740] sm:$0xf]  ;;  %v3477_v42 = vor.u32 %v4344_v36, %v3476_v33  ;;  %v4262_v21 = vld [vmem:[#allocation5 + $0x2c4] sm:$0xf]  ;;  %v3033_v33 = vor.u32 %v4230_v18, %v3030_v20 }
  0x50   :  { %v4408_v40 = vld [vmem:[#allocation5 + $0x74c] sm:$0xf0]  ;;  %v3605_v43 = vor.u32 %v4376_v38, %v3604_v37  ;;  %v3332_v44 = vld [vmem:[#allocation5 + $0x420] sm:$0xf]  ;;  %1726 = vmatpush.bf16.msrb.mxu0 %v3349_v41  ;;  %v3158_v22 = vld [vmem:[#allocation5 + $0x2d0] sm:$0xf0] }
  0x51   :  { %v4308_v45 = vld [vmem:[#allocation5 + $0x42c] sm:$0xf0]  ;;  %v3460_v46 = vld [vmem:[#allocation5 + $0x520] sm:$0xf]  ;;  %v3733_v47 = vor.u32 %v4408_v40, %v3732_v39  ;;  %1739 = vmatpush.bf16.msrb.mxu1 %v3477_v42  ;;  %v4294_v23 = vld [vmem:[#allocation5 + $0x3c4] sm:$0xf]  ;;  %v3161_v35 = vor.u32 %v4262_v21, %v3158_v22 }
  0x52   :  { %v4340_v48 = vld [vmem:[#allocation5 + $0x52c] sm:$0xf0]  ;;  %v3588_v49 = vld [vmem:[#allocation5 + $0x620] sm:$0xf]  ;;  %v3333_v53 = vor.u32 %v4308_v45, %v3332_v44  ;;  %1752 = vmatpush.bf16.msrb.mxu2 %v3605_v43  ;;  %v3286_v24 = vld [vmem:[#allocation5 + $0x3d0] sm:$0xf0] }
  0x53   :  { %v4372_v50 = vld [vmem:[#allocation5 + $0x62c] sm:$0xf0]  ;;  %v3716_v51 = vld [vmem:[#allocation5 + $0x720] sm:$0xf]  ;;  %v3461_v56 = vor.u32 %v4340_v48, %v3460_v46  ;;  %1765 = vmatpush.bf16.msrb.mxu3 %v3733_v47  ;;  %v4775_v25 = vld [vmem:[#allocation1 + $0x36] sm:$0xff]  ;;  %v3289_v39 = vor.u32 %v4294_v23, %v3286_v24 }
  0x54   :  { %v4404_v52 = vld [vmem:[#allocation5 + $0x72c] sm:$0xf0]  ;;  %v3316_v54 = vld [vmem:[#allocation5 + $0x400] sm:$0xf]  ;;  %v3589_v57 = vor.u32 %v4372_v50, %v3588_v49  ;;  %1727 = vmatpush.bf16.msrb.mxu0 %v3333_v53  ;;  %v4194_v30 = vld [vmem:[#allocation5 + $0xa4] sm:$0xf] }
  0x55   :  { %v4304_v55 = vld [vmem:[#allocation5 + $0x40c] sm:$0xf0]  ;;  %v3444_v58 = vld [vmem:[#allocation5 + $0x500] sm:$0xf]  ;;  %v3717_v61 = vor.u32 %v4404_v52, %v3716_v51  ;;  %1740 = vmatpush.bf16.msrb.mxu1 %v3461_v56  ;;  %v4777_v31 = vld [vmem:[#allocation1 + $0x24] sm:$0xff] }
  0x56   :  { %v4336_v59 = vld [vmem:[#allocation5 + $0x50c] sm:$0xf0]  ;;  %v3572_v60 = vld [vmem:[#allocation5 + $0x600] sm:$0xf]  ;;  %v3317_v4 = vor.u32 %v4304_v55, %v3316_v54  ;;  %1753 = vmatpush.bf16.msrb.mxu2 %v3589_v57  ;;  %v2886_v36 = vld [vmem:[#allocation5 + $0xb0] sm:$0xf0] }
  0x57   :  { %v4368_v62 = vld [vmem:[#allocation5 + $0x60c] sm:$0xf0]  ;;  %v3700_v63 = vld [vmem:[#allocation5 + $0x700] sm:$0xf]  ;;  %v3445_v8 = vor.u32 %v4336_v59, %v3444_v58  ;;  %1766 = vmatpush.bf16.msrb.mxu3 %v3717_v61  ;;  %v4226_v37 = vld [vmem:[#allocation5 + $0x1a4] sm:$0xf]  ;;  %v2889_v45 = vor.u32 %v4194_v30, %v2886_v36 }
  0x58   :  { %v4400_v0 = vld [vmem:[#allocation5 + $0x70c] sm:$0xf0]  ;;  %v3573_v9 = vor.u32 %v4368_v62, %v3572_v60  ;;  %1728 = vmatpush.bf16.msrb.mxu0 %v3317_v4  ;;  %v4781_v38 = vld [vmem:[#allocation1 + $0x2d] sm:$0xff]  ;;  %v3014_v40 = vld [vmem:[#allocation5 + $0x1b0] sm:$0xf0] }
  0x59   :  { %v3701_v12 = vor.u32 %v4400_v0, %v3700_v63  ;;  %1741 = vmatpush.bf16.msrb.mxu1 %v3445_v8  ;;  %v4779_v32 = vld [vmem:[#allocation1 + $0x3f] sm:$0xff]  ;;  %v4258_v41 = vld [vmem:[#allocation5 + $0x2a4] sm:$0xf]  ;;  %v3017_v46 = vor.u32 %v4226_v37, %v3014_v40 }
  0x5a   :  { %1754 = vmatpush.bf16.msrb.mxu2 %v3573_v9  ;;  %v3142_v42 = vld [vmem:[#allocation5 + $0x2b0] sm:$0xf0]  ;;  %v4290_v43 = vld [vmem:[#allocation5 + $0x3a4] sm:$0xf] }
  0x5b   :  { %1767 = vmatpush.bf16.msrb.mxu3 %v3701_v12  ;;  %v3270_v44 = vld [vmem:[#allocation5 + $0x3b0] sm:$0xf0]  ;;  %v3145_v47 = vor.u32 %v4258_v41, %v3142_v42  ;;  %v4190_v48 = vld [vmem:[#allocation5 + $0x84] sm:$0xf] }
  0x5c   :  { %1773 = vmatpush.bf16.msra.mxu0 %v2921_v13  ;;  %v2870_v49 = vld [vmem:[#allocation5 + $0x90] sm:$0xf0]  ;;  %v4222_v50 = vld [vmem:[#allocation5 + $0x184] sm:$0xf]  ;;  %v3273_v51 = vor.u32 %v4290_v43, %v3270_v44 }
  0x5d   :  { %1786 = vmatpush.bf16.msra.mxu1 %v3049_v14  ;;  %1755 = vmatmul.bf16.vlgmr.msrb.gmra.mxu2 %v4775_v25  ;;  %v2998_v52 = vld [vmem:[#allocation5 + $0x190] sm:$0xf0]  ;;  %v4254_v53 = vld [vmem:[#allocation5 + $0x284] sm:$0xf]  ;;  %v2873_v57 = vor.u32 %v4190_v48, %v2870_v49 }
  0x5e   :  { %1799 = vmatpush.bf16.msra.mxu2 %v3177_v15  ;;  %1729 = vmatmul.bf16.vlgmr.msrb.gmra.mxu0 %v4777_v31  ;;  %v3126_v54 = vld [vmem:[#allocation5 + $0x290] sm:$0xf0]  ;;  %v4286_v55 = vld [vmem:[#allocation5 + $0x384] sm:$0xf]  ;;  %v3001_v58 = vor.u32 %v4222_v50, %v2998_v52 }
  0x5f   :  { %1812 = vmatpush.bf16.msra.mxu3 %v3305_v19  ;;  %1742 = vmatmul.bf16.vlgmr.msrb.gmra.mxu1 %v4781_v38  ;;  %v3254_v56 = vld [vmem:[#allocation5 + $0x390] sm:$0xf0]  ;;  %v3129_v59 = vor.u32 %v4254_v53, %v3126_v54  ;;  %v4186_v60 = vld [vmem:[#allocation5 + $0x64] sm:$0xf] }
  0x60   :  { %1768 = vmatmul.bf16.vlgmr.msrb.gmra.mxu3 %v4779_v32  ;;  %1774 = vmatpush.bf16.msra.mxu0 %v2905_v26  ;;  %v2854_v61 = vld [vmem:[#allocation5 + $0x70] sm:$0xf0]  ;;  %v4218_v62 = vld [vmem:[#allocation5 + $0x164] sm:$0xf]  ;;  %v3257_v63 = vor.u32 %v4286_v55, %v3254_v56 }
  0x61   :  { %1787 = vmatpush.bf16.msra.mxu1 %v3033_v33  ;;  %v2982_v0 = vld [vmem:[#allocation5 + $0x170] sm:$0xf0]  ;;  %v4250_v1 = vld [vmem:[#allocation5 + $0x264] sm:$0xf]  ;;  %v2857_v5 = vor.u32 %v4186_v60, %v2854_v61 }
  0x62   :  { %1800 = vmatpush.bf16.msra.mxu2 %v3161_v35  ;;  %v3110_v2 = vld [vmem:[#allocation5 + $0x270] sm:$0xf0]  ;;  %v4282_v3 = vld [vmem:[#allocation5 + $0x364] sm:$0xf]  ;;  %v2985_v6 = vor.u32 %v4218_v62, %v2982_v0 }
  0x63   :  { %1813 = vmatpush.bf16.msra.mxu3 %v3289_v39  ;;  %v3238_v4 = vld [vmem:[#allocation5 + $0x370] sm:$0xf0]  ;;  %v3113_v7 = vor.u32 %v4250_v1, %v3110_v2  ;;  %v4182_v8 = vld [vmem:[#allocation5 + $0x44] sm:$0xf] }
  0x64   :  { %1775 = vmatpush.bf16.msra.mxu0 %v2889_v45  ;;  %v2838_v9 = vld [vmem:[#allocation5 + $0x50] sm:$0xf0]  ;;  %v4214_v10 = vld [vmem:[#allocation5 + $0x144] sm:$0xf]  ;;  %v3241_v11 = vor.u32 %v4282_v3, %v3238_v4 }
  0x65   :  { %1788 = vmatpush.bf16.msra.mxu1 %v3017_v46  ;;  %v2966_v12 = vld [vmem:[#allocation5 + $0x150] sm:$0xf0]  ;;  %v4246_v13 = vld [vmem:[#allocation5 + $0x244] sm:$0xf]  ;;  %v2841_v17 = vor.u32 %v4182_v8, %v2838_v9 }
  0x66   :  { %1801 = vmatpush.bf16.msra.mxu2 %v3145_v47  ;;  %v3094_v14 = vld [vmem:[#allocation5 + $0x250] sm:$0xf0]  ;;  %v4278_v15 = vld [vmem:[#allocation5 + $0x344] sm:$0xf]  ;;  %v2969_v18 = vor.u32 %v4214_v10, %v2966_v12 }
  0x67   :  { %1814 = vmatpush.bf16.msra.mxu3 %v3273_v51  ;;  %v3222_v16 = vld [vmem:[#allocation5 + $0x350] sm:$0xf0]  ;;  %v3097_v19 = vor.u32 %v4246_v13, %v3094_v14  ;;  %v4178_v20 = vld [vmem:[#allocation5 + $0x24] sm:$0xf] }
  0x68   :  { %1776 = vmatpush.bf16.msra.mxu0 %v2873_v57  ;;  %v2822_v21 = vld [vmem:[#allocation5 + $0x30] sm:$0xf0]  ;;  %v4210_v22 = vld [vmem:[#allocation5 + $0x124] sm:$0xf]  ;;  %v3225_v23 = vor.u32 %v4278_v15, %v3222_v16 }
  0x69   :  { %1789 = vmatpush.bf16.msra.mxu1 %v3001_v58  ;;  %v2950_v24 = vld [vmem:[#allocation5 + $0x130] sm:$0xf0]  ;;  %v4242_v26 = vld [vmem:[#allocation5 + $0x224] sm:$0xf]  ;;  %v2825_v36 = vor.u32 %v4178_v20, %v2822_v21 }
  0x6a   :  { %1802 = vmatpush.bf16.msra.mxu2 %v3129_v59  ;;  %v3078_v30 = vld [vmem:[#allocation5 + $0x230] sm:$0xf0]  ;;  %v4274_v33 = vld [vmem:[#allocation5 + $0x324] sm:$0xf]  ;;  %v2953_v40 = vor.u32 %v4210_v22, %v2950_v24 }
  0x6b   :  { %1815 = vmatpush.bf16.msra.mxu3 %v3257_v63  ;;  %v3206_v35 = vld [vmem:[#allocation5 + $0x330] sm:$0xf0]  ;;  %v4174_v37 = vld [vmem:[#allocation5 + $0x4] sm:$0xf]  ;;  %v3081_v41 = vor.u32 %v4242_v26, %v3078_v30 }
  0x6c   :  { %1777 = vmatpush.bf16.msra.mxu0 %v2857_v5  ;;  %v2806_v39 = vld [vmem:[#allocation5 + $0x10] sm:$0xf0]  ;;  %v4206_v42 = vld [vmem:[#allocation5 + $0x104] sm:$0xf]  ;;  %v3209_v45 = vor.u32 %v4274_v33, %v3206_v35 }
  0x6d   :  { %1790 = vmatpush.bf16.msra.mxu1 %v2985_v6  ;;  %v2934_v43 = vld [vmem:[#allocation5 + $0x110] sm:$0xf0]  ;;  %v4238_v44 = vld [vmem:[#allocation5 + $0x204] sm:$0xf]  ;;  %v2809_v52 = vor.u32 %v4174_v37, %v2806_v39 }
  0x6e   :  { %1803 = vmatpush.bf16.msra.mxu2 %v3113_v7  ;;  %v3062_v46 = vld [vmem:[#allocation5 + $0x210] sm:$0xf0]  ;;  %v4270_v47 = vld [vmem:[#allocation5 + $0x304] sm:$0xf]  ;;  %v2937_v56 = vor.u32 %v4206_v42, %v2934_v43 }
  0x6f   :  { %1816 = vmatpush.bf16.msra.mxu3 %v3241_v11  ;;  %v3190_v48 = vld [vmem:[#allocation5 + $0x310] sm:$0xf0]  ;;  %v4330_v49 = vld [vmem:[#allocation5 + $0x4e4] sm:$0xf]  ;;  %v3065_v57 = vor.u32 %v4238_v44, %v3062_v46 }
  0x70   :  { %1778 = vmatpush.bf16.msra.mxu0 %v2841_v17  ;;  %v3430_v50 = vld [vmem:[#allocation5 + $0x4f0] sm:$0xf0]  ;;  %v4362_v51 = vld [vmem:[#allocation5 + $0x5e4] sm:$0xf]  ;;  %v3193_v60 = vor.u32 %v4270_v47, %v3190_v48 }
  0x71   :  { %1791 = vmatpush.bf16.msra.mxu1 %v2969_v18  ;;  %v3558_v53 = vld [vmem:[#allocation5 + $0x5f0] sm:$0xf0]  ;;  %v4394_v54 = vld [vmem:[#allocation5 + $0x6e4] sm:$0xf]  ;;  %v3433_v61 = vor.u32 %v4330_v49, %v3430_v50 }
  0x72   :  { %1804 = vmatpush.bf16.msra.mxu2 %v3097_v19  ;;  %v3686_v55 = vld [vmem:[#allocation5 + $0x6f0] sm:$0xf0]  ;;  %v4426_v58 = vld [vmem:[#allocation5 + $0x7e4] sm:$0xf]  ;;  %v3561_v62 = vor.u32 %v4362_v51, %v3558_v53 }
  0x73   :  { %1817 = vmatpush.bf16.msra.mxu3 %v3225_v23  ;;  %v3814_v59 = vld [vmem:[#allocation5 + $0x7f0] sm:$0xf0]  ;;  %v3689_v63 = vor.u32 %v4394_v54, %v3686_v55  ;;  %v4326_v0 = vld [vmem:[#allocation5 + $0x4c4] sm:$0xf] }
  0x74   :  { %1779 = vmatpush.bf16.msra.mxu0 %v2825_v36  ;;  %v3414_v1 = vld [vmem:[#allocation5 + $0x4d0] sm:$0xf0]  ;;  %v4358_v2 = vld [vmem:[#allocation5 + $0x5c4] sm:$0xf]  ;;  %v3817_v3 = vor.u32 %v4426_v58, %v3814_v59 }
  0x75   :  { %1792 = vmatpush.bf16.msra.mxu1 %v2953_v40  ;;  %v3542_v4 = vld [vmem:[#allocation5 + $0x5d0] sm:$0xf0]  ;;  %v4390_v5 = vld [vmem:[#allocation5 + $0x6c4] sm:$0xf]  ;;  %v3417_v9 = vor.u32 %v4326_v0, %v3414_v1 }
  0x76   :  { %1805 = vmatpush.bf16.msra.mxu2 %v3081_v41  ;;  %v3670_v6 = vld [vmem:[#allocation5 + $0x6d0] sm:$0xf0]  ;;  %v4422_v7 = vld [vmem:[#allocation5 + $0x7c4] sm:$0xf]  ;;  %v3545_v10 = vor.u32 %v4358_v2, %v3542_v4 }
  0x77   :  { %1818 = vmatpush.bf16.msra.mxu3 %v3209_v45  ;;  %v3798_v8 = vld [vmem:[#allocation5 + $0x7d0] sm:$0xf0]  ;;  %v3673_v11 = vor.u32 %v4390_v5, %v3670_v6  ;;  %v4322_v12 = vld [vmem:[#allocation5 + $0x4a4] sm:$0xf] }
  0x78   :  { %1780 = vmatpush.bf16.msra.mxu0 %v2809_v52  ;;  %v3398_v13 = vld [vmem:[#allocation5 + $0x4b0] sm:$0xf0]  ;;  %v4354_v14 = vld [vmem:[#allocation5 + $0x5a4] sm:$0xf]  ;;  %v3801_v15 = vor.u32 %v4422_v7, %v3798_v8 }
  0x79   :  { %1793 = vmatpush.bf16.msra.mxu1 %v2937_v56  ;;  %v3526_v16 = vld [vmem:[#allocation5 + $0x5b0] sm:$0xf0]  ;;  %v4386_v17 = vld [vmem:[#allocation5 + $0x6a4] sm:$0xf]  ;;  %v3401_v21 = vor.u32 %v4322_v12, %v3398_v13 }
  0x7a   :  { %1806 = vmatpush.bf16.msra.mxu2 %v3065_v57  ;;  %v3654_v18 = vld [vmem:[#allocation5 + $0x6b0] sm:$0xf0]  ;;  %v4418_v19 = vld [vmem:[#allocation5 + $0x7a4] sm:$0xf]  ;;  %v3529_v22 = vor.u32 %v4354_v14, %v3526_v16 }
  0x7b   :  { %1819 = vmatpush.bf16.msra.mxu3 %v3193_v60  ;;  %v3782_v20 = vld [vmem:[#allocation5 + $0x7b0] sm:$0xf0]  ;;  %1781 = vmatmul.bf16.vlgmr.msra.gmra.mxu0 %v4765_v28  ;;  %v3657_v23 = vor.u32 %v4386_v17, %v3654_v18  ;;  %v4318_v24 = vld [vmem:[#allocation5 + $0x484] sm:$0xf] }
  0x7c   :  { %1825 = vmatpush.bf16.msrb.mxu0 %v3433_v61  ;;  %1794 = vmatmul.bf16.vlgmr.msra.gmra.mxu1 %v4769_v34  ;;  %v3382_v26 = vld [vmem:[#allocation5 + $0x490] sm:$0xf0]  ;;  %v4350_v30 = vld [vmem:[#allocation5 + $0x584] sm:$0xf]  ;;  %v3785_v33 = vor.u32 %v4418_v19, %v3782_v20 }
  0x7d   :  { %1838 = vmatpush.bf16.msrb.mxu1 %v3561_v62  ;;  %1807 = vmatmul.bf16.vlgmr.msra.gmra.mxu2 %v4763_v27  ;;  %v3510_v35 = vld [vmem:[#allocation5 + $0x590] sm:$0xf0]  ;;  %v4382_v36 = vld [vmem:[#allocation5 + $0x684] sm:$0xf]  ;;  %v3385_v41 = vor.u32 %v4318_v24, %v3382_v26  ;;  %v2924_v26 = vld [vmem:[#allocation5 + $0xe8] sm:$0xf] }
  0x7e   :  { %1851 = vmatpush.bf16.msrb.mxu2 %v3689_v63  ;;  %1820 = vmatmul.bf16.vlgmr.msra.gmra.mxu3 %v4767_v29  ;;  %v3638_v37 = vld [vmem:[#allocation5 + $0x690] sm:$0xf0]  ;;  %v4414_v39 = vld [vmem:[#allocation5 + $0x784] sm:$0xf]  ;;  %v3513_v42 = vor.u32 %v4350_v30, %v3510_v35  ;;  %v4205_v30 = vld [vmem:[#allocation5 + $0xf4] sm:$0xf0] }
  0x7f   :  { %1864 = vmatpush.bf16.msrb.mxu3 %v3817_v3  ;;  %v3766_v40 = vld [vmem:[#allocation5 + $0x790] sm:$0xf0]  ;;  %v3641_v43 = vor.u32 %v4382_v36, %v3638_v37  ;;  %v4314_v44 = vld [vmem:[#allocation5 + $0x464] sm:$0xf]  ;;  %v4237_v36 = vld [vmem:[#allocation5 + $0x1f4] sm:$0xf0] }
  0x80   :  { %1826 = vmatpush.bf16.msrb.mxu0 %v3417_v9  ;;  %v3366_v45 = vld [vmem:[#allocation5 + $0x470] sm:$0xf0]  ;;  %v4346_v46 = vld [vmem:[#allocation5 + $0x564] sm:$0xf]  ;;  %v3769_v47 = vor.u32 %v4414_v39, %v3766_v40  ;;  %v3180_v37 = vld [vmem:[#allocation5 + $0x2e8] sm:$0xf] }
  0x81   :  { %1839 = vmatpush.bf16.msrb.mxu1 %v3545_v10  ;;  %v3494_v48 = vld [vmem:[#allocation5 + $0x570] sm:$0xf0]  ;;  %v4378_v49 = vld [vmem:[#allocation5 + $0x664] sm:$0xf]  ;;  %v3369_v53 = vor.u32 %v4314_v44, %v3366_v45  ;;  %v4269_v39 = vld [vmem:[#allocation5 + $0x2f4] sm:$0xf0]  ;;  %v2925_v45 = vor.u32 %v4205_v30, %v2924_v26 }
  0x82   :  { %1852 = vmatpush.bf16.msrb.mxu2 %v3673_v11  ;;  %v3622_v50 = vld [vmem:[#allocation5 + $0x670] sm:$0xf0]  ;;  %v4410_v51 = vld [vmem:[#allocation5 + $0x764] sm:$0xf]  ;;  %v3497_v54 = vor.u32 %v4346_v46, %v3494_v48  ;;  %v2908_v48 = vld [vmem:[#allocation5 + $0xc8] sm:$0xf] }
  0x83   :  { %1865 = vmatpush.bf16.msrb.mxu3 %v3801_v15  ;;  %v3750_v52 = vld [vmem:[#allocation5 + $0x770] sm:$0xf0]  ;;  %v3625_v55 = vor.u32 %v4378_v49, %v3622_v50  ;;  %v4310_v56 = vld [vmem:[#allocation5 + $0x444] sm:$0xf]  ;;  %v4201_v49 = vld [vmem:[#allocation5 + $0xd4] sm:$0xf0] }
  0x84   :  { %1827 = vmatpush.bf16.msrb.mxu0 %v3401_v21  ;;  %v3350_v57 = vld [vmem:[#allocation5 + $0x450] sm:$0xf0]  ;;  %v4342_v58 = vld [vmem:[#allocation5 + $0x544] sm:$0xf]  ;;  %v3753_v59 = vor.u32 %v4410_v51, %v3750_v52  ;;  %v3036_v50 = vld [vmem:[#allocation5 + $0x1c8] sm:$0xf] }
  0x85   :  { %1840 = vmatpush.bf16.msrb.mxu1 %v3529_v22  ;;  %v3478_v60 = vld [vmem:[#allocation5 + $0x550] sm:$0xf0]  ;;  %v4374_v61 = vld [vmem:[#allocation5 + $0x644] sm:$0xf]  ;;  %v3353_v1 = vor.u32 %v4310_v56, %v3350_v57  ;;  %v4233_v52 = vld [vmem:[#allocation5 + $0x1d4] sm:$0xf0]  ;;  %v2909_v57 = vor.u32 %v4201_v49, %v2908_v48 }
  0x86   :  { %1853 = vmatpush.bf16.msrb.mxu2 %v3657_v23  ;;  %v3606_v62 = vld [vmem:[#allocation5 + $0x650] sm:$0xf0]  ;;  %v4406_v63 = vld [vmem:[#allocation5 + $0x744] sm:$0xf]  ;;  %v3481_v2 = vor.u32 %v4342_v58, %v3478_v60  ;;  %v4297_v56 = vld [vmem:[#allocation5 + $0x3d4] sm:$0xf0]  ;;  %v3037_v58 = vor.u32 %v4233_v52, %v3036_v50 }
  0x87   :  { %1866 = vmatpush.bf16.msrb.mxu3 %v3785_v33  ;;  %v3734_v0 = vld [vmem:[#allocation5 + $0x750] sm:$0xf0]  ;;  %v3609_v3 = vor.u32 %v4374_v61, %v3606_v62  ;;  %v4306_v4 = vld [vmem:[#allocation5 + $0x424] sm:$0xf]  ;;  %v3052_v33 = vld [vmem:[#allocation5 + $0x1e8] sm:$0xf] }
  0x88   :  { %1828 = vmatpush.bf16.msrb.mxu0 %v3385_v41  ;;  %v3334_v5 = vld [vmem:[#allocation5 + $0x430] sm:$0xf0]  ;;  %v4338_v6 = vld [vmem:[#allocation5 + $0x524] sm:$0xf]  ;;  %v3737_v7 = vor.u32 %v4406_v63, %v3734_v0  ;;  %v3053_v46 = vor.u32 %v4237_v36, %v3052_v33  ;;  %v2892_v60 = vld [vmem:[#allocation5 + $0xa8] sm:$0xf] }
  0x89   :  { %1841 = vmatpush.bf16.msrb.mxu1 %v3513_v42  ;;  %v3462_v8 = vld [vmem:[#allocation5 + $0x530] sm:$0xf0]  ;;  %v4370_v9 = vld [vmem:[#allocation5 + $0x624] sm:$0xf]  ;;  %v3337_v13 = vor.u32 %v4306_v4, %v3334_v5  ;;  %v3308_v42 = vld [vmem:[#allocation5 + $0x3e8] sm:$0xf] }
  0x8a   :  { %1854 = vmatpush.bf16.msrb.mxu2 %v3641_v43  ;;  %v3590_v10 = vld [vmem:[#allocation5 + $0x630] sm:$0xf0]  ;;  %v4402_v11 = vld [vmem:[#allocation5 + $0x724] sm:$0xf]  ;;  %v3465_v16 = vor.u32 %v4338_v6, %v3462_v8  ;;  %v4301_v43 = vld [vmem:[#allocation5 + $0x3f4] sm:$0xf0] }
  0x8b   :  { %1867 = vmatpush.bf16.msrb.mxu3 %v3769_v47  ;;  %v3718_v12 = vld [vmem:[#allocation5 + $0x730] sm:$0xf0]  ;;  %v4302_v14 = vld [vmem:[#allocation5 + $0x404] sm:$0xf]  ;;  %v3593_v17 = vor.u32 %v4370_v9, %v3590_v10  ;;  %v3181_v47 = vor.u32 %v4269_v39, %v3180_v37  ;;  %v3309_v51 = vor.u32 %v4301_v43, %v3308_v42  ;;  %v4197_v61 = vld [vmem:[#allocation5 + $0xb4] sm:$0xf0] }
  0x8c   :  { %1829 = vmatpush.bf16.msrb.mxu0 %v3369_v53  ;;  %v3318_v15 = vld [vmem:[#allocation5 + $0x410] sm:$0xf0]  ;;  %v4334_v18 = vld [vmem:[#allocation5 + $0x504] sm:$0xf]  ;;  %v3721_v21 = vor.u32 %v4402_v11, %v3718_v12  ;;  %v3164_v53 = vld [vmem:[#allocation5 + $0x2c8] sm:$0xf]  ;;  %v2893_v5 = vor.u32 %v4197_v61, %v2892_v60 }
  0x8d   :  { %1842 = vmatpush.bf16.msrb.mxu1 %v3497_v54  ;;  %v3446_v19 = vld [vmem:[#allocation5 + $0x510] sm:$0xf0]  ;;  %v4366_v20 = vld [vmem:[#allocation5 + $0x604] sm:$0xf]  ;;  %v3321_v35 = vor.u32 %v4302_v14, %v3318_v15  ;;  %v4265_v54 = vld [vmem:[#allocation5 + $0x2d4] sm:$0xf0] }
  0x8e   :  { %1855 = vmatpush.bf16.msrb.mxu2 %v3625_v55  ;;  %v3574_v22 = vld [vmem:[#allocation5 + $0x610] sm:$0xf0]  ;;  %v4398_v23 = vld [vmem:[#allocation5 + $0x704] sm:$0xf]  ;;  %v3449_v40 = vor.u32 %v4334_v18, %v3446_v19  ;;  %v3292_v55 = vld [vmem:[#allocation5 + $0x3c8] sm:$0xf] }
  0x8f   :  { %1868 = vmatpush.bf16.msrb.mxu3 %v3753_v59  ;;  %v3702_v24 = vld [vmem:[#allocation5 + $0x710] sm:$0xf0]  ;;  %v3577_v41 = vor.u32 %v4366_v20, %v3574_v22  ;;  %v3165_v59 = vor.u32 %v4265_v54, %v3164_v53  ;;  %v3020_v62 = vld [vmem:[#allocation5 + $0x1a8] sm:$0xf]  ;;  %v3293_v63 = vor.u32 %v4297_v56, %v3292_v55  ;;  %v4229_v0 = vld [vmem:[#allocation5 + $0x1b4] sm:$0xf0] }
  0x90   :  { %1830 = vmatpush.bf16.msrb.mxu0 %v3353_v1  ;;  %v3705_v44 = vor.u32 %v4398_v23, %v3702_v24  ;;  %v3148_v1 = vld [vmem:[#allocation5 + $0x2a8] sm:$0xf]  ;;  %v4293_v4 = vld [vmem:[#allocation5 + $0x3b4] sm:$0xf0]  ;;  %v3021_v6 = vor.u32 %v4229_v0, %v3020_v62 }
  0x91   :  { %1843 = vmatpush.bf16.msrb.mxu1 %v3481_v2  ;;  %v4261_v2 = vld [vmem:[#allocation5 + $0x2b4] sm:$0xf0]  ;;  %v2876_v8 = vld [vmem:[#allocation5 + $0x88] sm:$0xf] }
  0x92   :  { %1856 = vmatpush.bf16.msrb.mxu2 %v3609_v3  ;;  %v3276_v3 = vld [vmem:[#allocation5 + $0x3a8] sm:$0xf]  ;;  %v4193_v9 = vld [vmem:[#allocation5 + $0x94] sm:$0xf0] }
  0x93   :  { %1869 = vmatpush.bf16.msrb.mxu3 %v3737_v7  ;;  %v3149_v7 = vor.u32 %v4261_v2, %v3148_v1  ;;  %v3277_v10 = vor.u32 %v4293_v4, %v3276_v3  ;;  %v4225_v11 = vld [vmem:[#allocation5 + $0x194] sm:$0xf0]  ;;  %v3132_v12 = vld [vmem:[#allocation5 + $0x288] sm:$0xf] }
  0x94   :  { %1831 = vmatpush.bf16.msrb.mxu0 %v3337_v13  ;;  %v4257_v13 = vld [vmem:[#allocation5 + $0x294] sm:$0xf0]  ;;  %v3260_v14 = vld [vmem:[#allocation5 + $0x388] sm:$0xf] }
  0x95   :  { %1844 = vmatpush.bf16.msrb.mxu1 %v3465_v16  ;;  %v2860_v16 = vld [vmem:[#allocation5 + $0x68] sm:$0xf]  ;;  %v4221_v20 = vld [vmem:[#allocation5 + $0x174] sm:$0xf0] }
  0x96   :  { %1857 = vmatpush.bf16.msrb.mxu2 %v3593_v17  ;;  %v4189_v17 = vld [vmem:[#allocation5 + $0x74] sm:$0xf0]  ;;  %v2988_v18 = vld [vmem:[#allocation5 + $0x168] sm:$0xf] }
  0x97   :  { %1870 = vmatpush.bf16.msrb.mxu3 %v3721_v21  ;;  %v3116_v21 = vld [vmem:[#allocation5 + $0x268] sm:$0xf]  ;;  %v4253_v22 = vld [vmem:[#allocation5 + $0x274] sm:$0xf0]  ;;  %v2861_v26 = vor.u32 %v4189_v17, %v2860_v16  ;;  %v2989_v30 = vor.u32 %v4221_v20, %v2988_v18 }
  0x98   :  { %1832 = vmatpush.bf16.msrb.mxu0 %v3321_v35  ;;  %v3244_v23 = vld [vmem:[#allocation5 + $0x368] sm:$0xf]  ;;  %v4285_v24 = vld [vmem:[#allocation5 + $0x374] sm:$0xf0]  ;;  %v3117_v33 = vor.u32 %v4253_v22, %v3116_v21 }
  0x99   :  { %1845 = vmatpush.bf16.msrb.mxu1 %v3449_v40  ;;  %v2844_v35 = vld [vmem:[#allocation5 + $0x48] sm:$0xf]  ;;  %v4185_v36 = vld [vmem:[#allocation5 + $0x54] sm:$0xf0]  ;;  %v3245_v39 = vor.u32 %v4285_v24, %v3244_v23 }
  0x9a   :  { %1858 = vmatpush.bf16.msrb.mxu2 %v3577_v41  ;;  %v2972_v37 = vld [vmem:[#allocation5 + $0x148] sm:$0xf]  ;;  %v4217_v40 = vld [vmem:[#allocation5 + $0x154] sm:$0xf0] }
  0x9b   :  { %1871 = vmatpush.bf16.msrb.mxu3 %v3705_v44  ;;  %1833 = vmatmul.bf16.vlgmr.msrb.gmra.mxu0 %v4777_v31  ;;  %v4289_v31 = vld [vmem:[#allocation5 + $0x394] sm:$0xf0]  ;;  %v3100_v41 = vld [vmem:[#allocation5 + $0x248] sm:$0xf] }
  0x9c   :  { %1877 = vmatpush.bf16.msra.mxu0 %v2925_v45  ;;  %1846 = vmatmul.bf16.vlgmr.msrb.gmra.mxu1 %v4781_v38  ;;  %v3133_v38 = vor.u32 %v4257_v13, %v3132_v12  ;;  %v3261_v19 = vor.u32 %v4289_v31, %v3260_v14  ;;  %v4249_v42 = vld [vmem:[#allocation5 + $0x254] sm:$0xf0]  ;;  %v3228_v43 = vld [vmem:[#allocation5 + $0x348] sm:$0xf]  ;;  %v2845_v45 = vor.u32 %v4185_v36, %v2844_v35 }
  0x9d   :  { %1890 = vmatpush.bf16.msra.mxu1 %v3053_v46  ;;  %1859 = vmatmul.bf16.vlgmr.msrb.gmra.mxu2 %v4775_v25  ;;  %v3004_v25 = vld [vmem:[#allocation5 + $0x188] sm:$0xf]  ;;  %v4281_v44 = vld [vmem:[#allocation5 + $0x354] sm:$0xf0]  ;;  %v2973_v46 = vor.u32 %v4217_v40, %v2972_v37 }
  0x9e   :  { %1903 = vmatpush.bf16.msra.mxu2 %v3181_v47  ;;  %1872 = vmatmul.bf16.vlgmr.msrb.gmra.mxu3 %v4779_v32  ;;  %v2877_v32 = vor.u32 %v4193_v9, %v2876_v8  ;;  %v3005_v15 = vor.u32 %v4225_v11, %v3004_v25  ;;  %v3101_v47 = vor.u32 %v4249_v42, %v3100_v41  ;;  %v2828_v48 = vld [vmem:[#allocation5 + $0x28] sm:$0xf]  ;;  %v4181_v49 = vld [vmem:[#allocation5 + $0x34] sm:$0xf0] }
  0x9f   :  { %1916 = vmatpush.bf16.msra.mxu3 %v3309_v51  ;;  %v2956_v50 = vld [vmem:[#allocation5 + $0x128] sm:$0xf]  ;;  %v3229_v51 = vor.u32 %v4281_v44, %v3228_v43  ;;  %v4213_v52 = vld [vmem:[#allocation5 + $0x134] sm:$0xf0] }
  0xa0   :  { %1878 = vmatpush.bf16.msra.mxu0 %v2909_v57  ;;  %v3084_v53 = vld [vmem:[#allocation5 + $0x228] sm:$0xf]  ;;  %v4245_v54 = vld [vmem:[#allocation5 + $0x234] sm:$0xf0]  ;;  %v2829_v57 = vor.u32 %v4181_v49, %v2828_v48  ;;  %v2957_v60 = vor.u32 %v4213_v52, %v2956_v50 }
  0xa1   :  { %1891 = vmatpush.bf16.msra.mxu1 %v3037_v58  ;;  %v3212_v55 = vld [vmem:[#allocation5 + $0x328] sm:$0xf]  ;;  %v4277_v56 = vld [vmem:[#allocation5 + $0x334] sm:$0xf0]  ;;  %v3085_v61 = vor.u32 %v4245_v54, %v3084_v53 }
  0xa2   :  { %1904 = vmatpush.bf16.msra.mxu2 %v3165_v59  ;;  %v2812_v58 = vld [vmem:[#allocation5 + $0x8] sm:$0xf]  ;;  %v4177_v59 = vld [vmem:[#allocation5 + $0x14] sm:$0xf0]  ;;  %v3213_v1 = vor.u32 %v4277_v56, %v3212_v55 }
  0xa3   :  { %1917 = vmatpush.bf16.msra.mxu3 %v3293_v63  ;;  %v2940_v62 = vld [vmem:[#allocation5 + $0x108] sm:$0xf]  ;;  %v4209_v63 = vld [vmem:[#allocation5 + $0x114] sm:$0xf0]  ;;  %v2813_v8 = vor.u32 %v4177_v59, %v2812_v58 }
  0xa4   :  { %1879 = vmatpush.bf16.msra.mxu0 %v2893_v5  ;;  %v3068_v0 = vld [vmem:[#allocation5 + $0x208] sm:$0xf]  ;;  %v4241_v2 = vld [vmem:[#allocation5 + $0x214] sm:$0xf0]  ;;  %v2941_v11 = vor.u32 %v4209_v63, %v2940_v62 }
  0xa5   :  { %1892 = vmatpush.bf16.msra.mxu1 %v3021_v6  ;;  %v3196_v3 = vld [vmem:[#allocation5 + $0x308] sm:$0xf]  ;;  %v4273_v4 = vld [vmem:[#allocation5 + $0x314] sm:$0xf0]  ;;  %v3069_v12 = vor.u32 %v4241_v2, %v3068_v0 }
  0xa6   :  { %1905 = vmatpush.bf16.msra.mxu2 %v3149_v7  ;;  %v3436_v5 = vld [vmem:[#allocation5 + $0x4e8] sm:$0xf]  ;;  %v4333_v6 = vld [vmem:[#allocation5 + $0x4f4] sm:$0xf0]  ;;  %v3197_v31 = vor.u32 %v4273_v4, %v3196_v3 }
  0xa7   :  { %1918 = vmatpush.bf16.msra.mxu3 %v3277_v10  ;;  %v3564_v7 = vld [vmem:[#allocation5 + $0x5e8] sm:$0xf]  ;;  %v4365_v9 = vld [vmem:[#allocation5 + $0x5f4] sm:$0xf0] }
  0xa8   :  { %1880 = vmatpush.bf16.msra.mxu0 %v2877_v32  ;;  %v3692_v25 = vld [vmem:[#allocation5 + $0x6e8] sm:$0xf]  ;;  %v4397_v10 = vld [vmem:[#allocation5 + $0x6f4] sm:$0xf0]  ;;  %v3437_v32 = vor.u32 %v4333_v6, %v3436_v5 }
  0xa9   :  { %1893 = vmatpush.bf16.msra.mxu1 %v3005_v15  ;;  %v3820_v13 = vld [vmem:[#allocation5 + $0x7e8] sm:$0xf]  ;;  %v4429_v14 = vld [vmem:[#allocation5 + $0x7f4] sm:$0xf0]  ;;  %v3565_v15 = vor.u32 %v4365_v9, %v3564_v7 }
  0xaa   :  { %1906 = vmatpush.bf16.msra.mxu2 %v3133_v38  ;;  %v3693_v38 = vor.u32 %v4397_v10, %v3692_v25  ;;  %v3420_v16 = vld [vmem:[#allocation5 + $0x4c8] sm:$0xf]  ;;  %v4329_v17 = vld [vmem:[#allocation5 + $0x4d4] sm:$0xf0]  ;;  %v4799_v10 = vld [vmem:[#allocation7] sm:$0xf] }
  0xab   :  { %1919 = vmatpush.bf16.msra.mxu3 %v3261_v19  ;;  %v3548_v18 = vld [vmem:[#allocation5 + $0x5c8] sm:$0xf]  ;;  %v3821_v19 = vor.u32 %v4429_v14, %v3820_v13  ;;  %v4361_v20 = vld [vmem:[#allocation5 + $0x5d4] sm:$0xf0] }
  0xac   :  { %1881 = vmatpush.bf16.msra.mxu0 %v2861_v26  ;;  %v3676_v21 = vld [vmem:[#allocation5 + $0x6c8] sm:$0xf]  ;;  %v4393_v22 = vld [vmem:[#allocation5 + $0x6d4] sm:$0xf0]  ;;  %v3421_v26 = vor.u32 %v4329_v17, %v3420_v16  ;;  %v1661_v16 = vperm.slane %v4799_v10, 0 }
  0xad   :  { %1894 = vmatpush.bf16.msra.mxu1 %v2989_v30  ;;  %v3804_v23 = vld [vmem:[#allocation5 + $0x7c8] sm:$0xf]  ;;  %v4425_v24 = vld [vmem:[#allocation5 + $0x7d4] sm:$0xf0]  ;;  %v3549_v30 = vor.u32 %v4361_v20, %v3548_v18 }
  0xae   :  { %1907 = vmatpush.bf16.msra.mxu2 %v3117_v33  ;;  %v3677_v33 = vor.u32 %v4393_v22, %v3676_v21  ;;  %v3404_v35 = vld [vmem:[#allocation5 + $0x4a8] sm:$0xf]  ;;  %v4325_v36 = vld [vmem:[#allocation5 + $0x4b4] sm:$0xf0] }
  0xaf   :  { %1920 = vmatpush.bf16.msra.mxu3 %v3245_v39  ;;  %v3532_v37 = vld [vmem:[#allocation5 + $0x5a8] sm:$0xf]  ;;  %v3805_v39 = vor.u32 %v4425_v24, %v3804_v23  ;;  %v4357_v40 = vld [vmem:[#allocation5 + $0x5b4] sm:$0xf0] }
  0xb0   :  { %1882 = vmatpush.bf16.msra.mxu0 %v2845_v45  ;;  %v3660_v41 = vld [vmem:[#allocation5 + $0x6a8] sm:$0xf]  ;;  %v4389_v42 = vld [vmem:[#allocation5 + $0x6b4] sm:$0xf0]  ;;  %v3405_v45 = vor.u32 %v4325_v36, %v3404_v35 }
  0xb1   :  { %1895 = vmatpush.bf16.msra.mxu1 %v2973_v46  ;;  %v3788_v43 = vld [vmem:[#allocation5 + $0x7a8] sm:$0xf]  ;;  %v4421_v44 = vld [vmem:[#allocation5 + $0x7b4] sm:$0xf0]  ;;  %v3533_v46 = vor.u32 %v4357_v40, %v3532_v37 }
  0xb2   :  { %1908 = vmatpush.bf16.msra.mxu2 %v3101_v47  ;;  %v3661_v47 = vor.u32 %v4389_v42, %v3660_v41  ;;  %v3388_v48 = vld [vmem:[#allocation5 + $0x488] sm:$0xf]  ;;  %v4321_v49 = vld [vmem:[#allocation5 + $0x494] sm:$0xf0] }
  0xb3   :  { %1921 = vmatpush.bf16.msra.mxu3 %v3229_v51  ;;  %v3516_v50 = vld [vmem:[#allocation5 + $0x588] sm:$0xf]  ;;  %v3789_v51 = vor.u32 %v4421_v44, %v3788_v43  ;;  %v4385_v53 = vld [vmem:[#allocation5 + $0x694] sm:$0xf0] }
  0xb4   :  { %1883 = vmatpush.bf16.msra.mxu0 %v2829_v57  ;;  %v3644_v52 = vld [vmem:[#allocation5 + $0x688] sm:$0xf]  ;;  %v4317_v57 = vld [vmem:[#allocation5 + $0x474] sm:$0xf0] }
  0xb5   :  { %1896 = vmatpush.bf16.msra.mxu1 %v2957_v60  ;;  %v3772_v54 = vld [vmem:[#allocation5 + $0x788] sm:$0xf]  ;;  %v4349_v60 = vld [vmem:[#allocation5 + $0x574] sm:$0xf0] }
  0xb6   :  { %1909 = vmatpush.bf16.msra.mxu2 %v3085_v61  ;;  %v3372_v56 = vld [vmem:[#allocation5 + $0x468] sm:$0xf]  ;;  %v4381_v62 = vld [vmem:[#allocation5 + $0x674] sm:$0xf0] }
  0xb7   :  { %1922 = vmatpush.bf16.msra.mxu3 %v3213_v1  ;;  %v3500_v58 = vld [vmem:[#allocation5 + $0x568] sm:$0xf]  ;;  %v4413_v0 = vld [vmem:[#allocation5 + $0x774] sm:$0xf0]  ;;  %v3373_v1 = vor.u32 %v4317_v57, %v3372_v56 }
  0xb8   :  { %1884 = vmatpush.bf16.msra.mxu0 %v2813_v8  ;;  %v3628_v61 = vld [vmem:[#allocation5 + $0x668] sm:$0xf]  ;;  %v3501_v3 = vor.u32 %v4349_v60, %v3500_v58  ;;  %v4313_v5 = vld [vmem:[#allocation5 + $0x454] sm:$0xf0] }
  0xb9   :  { %1897 = vmatpush.bf16.msra.mxu1 %v2941_v11  ;;  %v3756_v63 = vld [vmem:[#allocation5 + $0x768] sm:$0xf]  ;;  %v3629_v4 = vor.u32 %v4381_v62, %v3628_v61  ;;  %v4345_v7 = vld [vmem:[#allocation5 + $0x554] sm:$0xf0]  ;;  %v4199_v61 = vld [vmem:[#allocation5 + $0xcc] sm:$0xf] }
  0xba   :  { %1910 = vmatpush.bf16.msra.mxu2 %v3069_v12  ;;  %v3356_v2 = vld [vmem:[#allocation5 + $0x448] sm:$0xf]  ;;  %v3757_v8 = vor.u32 %v4413_v0, %v3756_v63  ;;  %v4377_v25 = vld [vmem:[#allocation5 + $0x654] sm:$0xf0]  ;;  %v2910_v62 = vld [vmem:[#allocation5 + $0xd8] sm:$0xf0] }
  0xbb   :  { %1923 = vmatpush.bf16.msra.mxu3 %v3197_v31  ;;  %1885 = vmatmul.bf16.vlgmr.msra.gmra.mxu0 %v4765_v28  ;;  %v4417_v28 = vld [vmem:[#allocation5 + $0x794] sm:$0xf0]  ;;  %v3484_v6 = vld [vmem:[#allocation5 + $0x548] sm:$0xf]  ;;  %v3357_v13 = vor.u32 %v4313_v5, %v3356_v2  ;;  %v4231_v63 = vld [vmem:[#allocation5 + $0x1cc] sm:$0xf] }
  0xbc   :  { %1929 = vmatpush.bf16.msrb.mxu0 %v3437_v32  ;;  %1898 = vmatmul.bf16.vlgmr.msra.gmra.mxu1 %v4769_v34  ;;  %v3645_v34 = vor.u32 %v4385_v53, %v3644_v52  ;;  %v3773_v59 = vor.u32 %v4417_v28, %v3772_v54  ;;  %v3612_v9 = vld [vmem:[#allocation5 + $0x648] sm:$0xf]  ;;  %v4409_v12 = vld [vmem:[#allocation5 + $0x754] sm:$0xf0]  ;;  %v3485_v31 = vor.u32 %v4345_v7, %v3484_v6  ;;  %v3182_v52 = vld [vmem:[#allocation5 + $0x2f8] sm:$0xf0] }
  0xbd   :  { %1942 = vmatpush.bf16.msrb.mxu1 %v3565_v15  ;;  %1911 = vmatmul.bf16.vlgmr.msra.gmra.mxu2 %v4763_v27  ;;  %v4353_v27 = vld [vmem:[#allocation5 + $0x594] sm:$0xf0]  ;;  %v3740_v11 = vld [vmem:[#allocation5 + $0x748] sm:$0xf]  ;;  %v3613_v32 = vor.u32 %v4377_v25, %v3612_v9  ;;  %v4299_v28 = vld [vmem:[#allocation5 + $0x3ec] sm:$0xf]  ;;  %v2913_v9 = vor.u32 %v4199_v61, %v2910_v62 }
  0xbe   :  { %1955 = vmatpush.bf16.msrb.mxu2 %v3693_v38  ;;  %1924 = vmatmul.bf16.vlgmr.msra.gmra.mxu3 %v4767_v29  ;;  %v3389_v29 = vor.u32 %v4321_v49, %v3388_v48  ;;  %v3517_v55 = vor.u32 %v4353_v27, %v3516_v50  ;;  %v3340_v14 = vld [vmem:[#allocation5 + $0x428] sm:$0xf]  ;;  %v4309_v15 = vld [vmem:[#allocation5 + $0x434] sm:$0xf0]  ;;  %v3741_v17 = vor.u32 %v4409_v12, %v3740_v11  ;;  %v4235_v48 = vld [vmem:[#allocation5 + $0x1ec] sm:$0xf] }
  0xbf   :  { %1968 = vmatpush.bf16.msrb.mxu3 %v3821_v19  ;;  %v3468_v38 = vld [vmem:[#allocation5 + $0x528] sm:$0xf]  ;;  %v4341_v18 = vld [vmem:[#allocation5 + $0x534] sm:$0xf0]  ;;  %v3341_v23 = vor.u32 %v4309_v15, %v3340_v14  ;;  %v4267_v27 = vld [vmem:[#allocation5 + $0x2ec] sm:$0xf] }
  0xc0   :  { %1930 = vmatpush.bf16.msrb.mxu0 %v3421_v26  ;;  %v3596_v19 = vld [vmem:[#allocation5 + $0x628] sm:$0xf]  ;;  %v4373_v20 = vld [vmem:[#allocation5 + $0x634] sm:$0xf0]  ;;  %v3185_v60 = vor.u32 %v4267_v27, %v3182_v52  ;;  %v4263_v2 = vld [vmem:[#allocation5 + $0x2cc] sm:$0xf] }
  0xc1   :  { %1943 = vmatpush.bf16.msrb.mxu1 %v3549_v30  ;;  %v3724_v21 = vld [vmem:[#allocation5 + $0x728] sm:$0xf]  ;;  %v4405_v22 = vld [vmem:[#allocation5 + $0x734] sm:$0xf0]  ;;  %v3597_v35 = vor.u32 %v4373_v20, %v3596_v19  ;;  %v4295_v6 = vld [vmem:[#allocation5 + $0x3cc] sm:$0xf] }
  0xc2   :  { %1956 = vmatpush.bf16.msrb.mxu2 %v3677_v33  ;;  %v3324_v24 = vld [vmem:[#allocation5 + $0x408] sm:$0xf]  ;;  %v4305_v26 = vld [vmem:[#allocation5 + $0x414] sm:$0xf0]  ;;  %v3469_v33 = vor.u32 %v4341_v18, %v3468_v38  ;;  %v3725_v42 = vor.u32 %v4405_v22, %v3724_v21  ;;  %v3294_v7 = vld [vmem:[#allocation5 + $0x3d8] sm:$0xf0] }
  0xc3   :  { %1969 = vmatpush.bf16.msrb.mxu3 %v3805_v39  ;;  %v3452_v36 = vld [vmem:[#allocation5 + $0x508] sm:$0xf]  ;;  %v4337_v37 = vld [vmem:[#allocation5 + $0x514] sm:$0xf0]  ;;  %v3325_v50 = vor.u32 %v4305_v26, %v3324_v24  ;;  %v4195_v12 = vld [vmem:[#allocation5 + $0xac] sm:$0xf] }
  0xc4   :  { %1931 = vmatpush.bf16.msrb.mxu0 %v3405_v45  ;;  %v3580_v39 = vld [vmem:[#allocation5 + $0x608] sm:$0xf]  ;;  %v4369_v43 = vld [vmem:[#allocation5 + $0x614] sm:$0xf0]  ;;  %v3453_v53 = vor.u32 %v4337_v37, %v3452_v36  ;;  %v4227_v14 = vld [vmem:[#allocation5 + $0x1ac] sm:$0xf] }
  0xc5   :  { %1944 = vmatpush.bf16.msrb.mxu1 %v3533_v46  ;;  %v3708_v44 = vld [vmem:[#allocation5 + $0x708] sm:$0xf]  ;;  %v4401_v45 = vld [vmem:[#allocation5 + $0x714] sm:$0xf0]  ;;  %v4203_v46 = vld [vmem:[#allocation5 + $0xec] sm:$0xf]  ;;  %v3581_v54 = vor.u32 %v4369_v43, %v3580_v39 }
  0xc6   :  { %1957 = vmatpush.bf16.msrb.mxu2 %v3661_v47  ;;  %v2926_v47 = vld [vmem:[#allocation5 + $0xf8] sm:$0xf0]  ;;  %v4259_v38 = vld [vmem:[#allocation5 + $0x2ac] sm:$0xf] }
  0xc7   :  { %1970 = vmatpush.bf16.msrb.mxu3 %v3789_v51  ;;  %v3054_v51 = vld [vmem:[#allocation5 + $0x1f8] sm:$0xf0]  ;;  %v2929_v56 = vor.u32 %v4203_v46, %v2926_v47  ;;  %v4808_v18 = vld [vmem:[#allocation1 + $0x3f] sm:$0xff] }
  0xc8   :  { %1932 = vmatpush.bf16.msrb.mxu0 %v3389_v29  ;;  %v3310_v29 = vld [vmem:[#allocation5 + $0x3f8] sm:$0xf0]  ;;  %v4291_v19 = vld [vmem:[#allocation5 + $0x3ac] sm:$0xf] }
  0xc9   :  { %1945 = vmatpush.bf16.msrb.mxu1 %v3517_v55  ;;  %v1678_v30 = vpop.f32.mrf.mxu0  ;;  %v3313_v0 = vor.u32 %v4299_v28, %v3310_v29  ;;  %v3022_v15 = vld [vmem:[#allocation5 + $0x1b8] sm:$0xf0]  ;;  %v4223_v36 = vld [vmem:[#allocation5 + $0x18c] sm:$0xf] }
  0xca   :  { %1958 = vmatpush.bf16.msrb.mxu2 %v3645_v34  ;;  %v1679_v40 = vadd.f32 %v1678_v30, %v1661_v16  ;;  %v3709_v34 = vor.u32 %v4401_v45, %v3708_v44  ;;  %v3150_v16 = vld [vmem:[#allocation5 + $0x2b8] sm:$0xf0]  ;;  %v3025_v26 = vor.u32 %v4227_v14, %v3022_v15  ;;  %v4283_v29 = vld [vmem:[#allocation5 + $0x36c] sm:$0xf] }
  0xcb   :  { %1971 = vmatpush.bf16.msrb.mxu3 %v3773_v59  ;;  %v1691_v41 = vpop.f32.mrf.mxu1  ;;  %v3057_v59 = vor.u32 %v4235_v48, %v3054_v51  ;;  %v3278_v20 = vld [vmem:[#allocation5 + $0x3b8] sm:$0xf0]  ;;  %v3153_v30 = vor.u32 %v4259_v38, %v3150_v16  ;;  %v4187_v48 = vld [vmem:[#allocation5 + $0x6c] sm:$0xf] }
  0xcc   :  { %1933 = vmatpush.bf16.msrb.mxu0 %v3373_v1  ;;  %v1692_v49 = vadd.f32 %v1691_v41, %v1679_v40  ;;  %v3038_v1 = vld [vmem:[#allocation5 + $0x1d8] sm:$0xf0]  ;;  %v3281_v37 = vor.u32 %v4291_v19, %v3278_v20  ;;  %v4255_v40 = vld [vmem:[#allocation5 + $0x28c] sm:$0xf] }
  0xcd   :  { %1946 = vmatpush.bf16.msrb.mxu1 %v3501_v3  ;;  %v3166_v3 = vld [vmem:[#allocation5 + $0x2d8] sm:$0xf0]  ;;  %v3041_v25 = vor.u32 %v4231_v63, %v3038_v1  ;;  %v4215_v61 = vld [vmem:[#allocation5 + $0x14c] sm:$0xf] }
  0xce   :  { %1959 = vmatpush.bf16.msrb.mxu2 %v3629_v4  ;;  %v3169_v11 = vor.u32 %v4263_v2, %v3166_v3  ;;  %v4811_v22 = vld [vmem:[#allocation1 + $0x2d] sm:$0xff]  ;;  %v4247_v1 = vld [vmem:[#allocation5 + $0x24c] sm:$0xf] }
  0xcf   :  { %1972 = vmatpush.bf16.msrb.mxu3 %v3757_v8  ;;  %v3006_v39 = vld [vmem:[#allocation5 + $0x198] sm:$0xf0]  ;;  %v4211_v14 = vld [vmem:[#allocation5 + $0x12c] sm:$0xf] }
  0xd0   :  { %1934 = vmatpush.bf16.msrb.mxu0 %v3357_v13  ;;  %v1704_v55 = vpop.f32.mrf.mxu2  ;;  %v1717_v58 = vpop.f32.mrf.mxu3  ;;  %v2894_v13 = vld [vmem:[#allocation5 + $0xb8] sm:$0xf0]  ;;  %v3009_v46 = vor.u32 %v4223_v36, %v3006_v39  ;;  %v4243_v16 = vld [vmem:[#allocation5 + $0x22c] sm:$0xf] }
  0xd1   :  { %1947 = vmatpush.bf16.msrb.mxu1 %v3485_v31  ;;  %v1705_v57 = vadd.f32 %v1704_v55, %v1692_v49  ;;  %v1680_v5 = vpop.f32.mrf.mxu0  ;;  %v4802_v31 = vld [vmem:[#allocation1 + $0x36] sm:$0xff]  ;;  %v3134_v41 = vld [vmem:[#allocation5 + $0x298] sm:$0xf0] }
  0xd2   :  { %1960 = vmatpush.bf16.msrb.mxu2 %v3613_v32  ;;  %v3297_v32 = vor.u32 %v4295_v6, %v3294_v7  ;;  %v3262_v43 = vld [vmem:[#allocation5 + $0x398] sm:$0xf0]  ;;  %v3137_v47 = vor.u32 %v4255_v40, %v3134_v41  ;;  %v4279_v5 = vld [vmem:[#allocation5 + $0x34c] sm:$0xf] }
  0xd3   :  { %1973 = vmatpush.bf16.msrb.mxu3 %v3741_v17  ;;  %v1718_v4 = vadd.f32 %v1717_v58, %v1705_v57  ;;  %v1693_v8 = vpop.f32.mrf.mxu1  ;;  %v4805_v17 = vld [vmem:[#allocation1 + $0x24] sm:$0xff]  ;;  %v2862_v49 = vld [vmem:[#allocation5 + $0x78] sm:$0xf0]  ;;  %v4275_v20 = vld [vmem:[#allocation5 + $0x32c] sm:$0xf] }
  0xd4   :  { %1935 = vmatpush.bf16.msrb.mxu0 %v3341_v23  ;;  %v2897_v23 = vor.u32 %v4195_v12, %v2894_v13  ;;  %v3118_v28 = vld [vmem:[#allocation5 + $0x278] sm:$0xf0]  ;;  %v4179_v12 = vld [vmem:[#allocation5 + $0x2c] sm:$0xf] }
  0xd5   :  { %1948 = vmatpush.bf16.msrb.mxu1 %v3469_v33  ;;  %v4191_v33 = vld [vmem:[#allocation5 + $0x8c] sm:$0xf]  ;;  %v3246_v55 = vld [vmem:[#allocation5 + $0x378] sm:$0xf0] }
  0xd6   :  { %1961 = vmatpush.bf16.msrb.mxu2 %v3597_v35  ;;  %v2878_v35 = vld [vmem:[#allocation5 + $0x98] sm:$0xf0]  ;;  %v3249_v63 = vor.u32 %v4283_v29, %v3246_v55 }
  0xd7   :  { %1974 = vmatpush.bf16.msrb.mxu3 %v3725_v42  ;;  %v4287_v42 = vld [vmem:[#allocation5 + $0x38c] sm:$0xf]  ;;  %v2881_v44 = vor.u32 %v4191_v33, %v2878_v35  ;;  %v3102_v2 = vld [vmem:[#allocation5 + $0x258] sm:$0xf0] }
  0xd8   :  { %1936 = vmatpush.bf16.msrb.mxu0 %v3325_v50  ;;  %v1706_v21 = vpop.f32.mrf.mxu2  ;;  %v1719_v24 = vpop.f32.mrf.mxu3  ;;  %v4219_v50 = vld [vmem:[#allocation5 + $0x16c] sm:$0xf]  ;;  %v3265_v52 = vor.u32 %v4287_v42, %v3262_v43  ;;  %v3230_v6 = vld [vmem:[#allocation5 + $0x358] sm:$0xf0] }
  0xd9   :  { %1949 = vmatpush.bf16.msrb.mxu1 %v3453_v53  ;;  %v2990_v53 = vld [vmem:[#allocation5 + $0x178] sm:$0xf0]  ;;  %v3233_v15 = vor.u32 %v4279_v5, %v3230_v6  ;;  %v4175_v24 = vld [vmem:[#allocation5 + $0xc] sm:$0xf] }
  0xda   :  { %1962 = vmatpush.bf16.msrb.mxu2 %v3581_v54  ;;  %v4251_v54 = vld [vmem:[#allocation5 + $0x26c] sm:$0xf]  ;;  %v2993_v57 = vor.u32 %v4219_v50, %v2990_v53  ;;  %v2830_v13 = vld [vmem:[#allocation5 + $0x38] sm:$0xf0] }
  0xdb   :  { %1975 = vmatpush.bf16.msrb.mxu3 %v3709_v34  ;;  %1937 = vmatmul.bf16.vlgmr.msrb.gmra.mxu0 %v4805_v17  ;;  %v1730_v45 = vpop.f32.mrf.mxu0  ;;  %v3121_v58 = vor.u32 %v4251_v54, %v3118_v28  ;;  %v2958_v38 = vld [vmem:[#allocation5 + $0x138] sm:$0xf0]  ;;  %v4207_v35 = vld [vmem:[#allocation5 + $0x10c] sm:$0xf] }
  0xdc   :  { %1981 = vmatpush.bf16.msra.mxu0 %v2929_v56  ;;  %1950 = vmatmul.bf16.vlgmr.msrb.gmra.mxu1 %v4811_v22  ;;  %v1731_v51 = vadd.f32 %v1730_v45, %v1718_v4  ;;  %v1743_v27 = vpop.f32.mrf.mxu1  ;;  %v2865_v56 = vor.u32 %v4187_v48, %v2862_v49  ;;  %v3086_v19 = vld [vmem:[#allocation5 + $0x238] sm:$0xf0]  ;;  %v4271_v42 = vld [vmem:[#allocation5 + $0x30c] sm:$0xf] }
  0xdd   :  { %1994 = vmatpush.bf16.msra.mxu1 %v3057_v59  ;;  %1963 = vmatmul.bf16.vlgmr.msrb.gmra.mxu2 %v4802_v31  ;;  %v4183_v59 = vld [vmem:[#allocation5 + $0x4c] sm:$0xf]  ;;  %v3214_v21 = vld [vmem:[#allocation5 + $0x338] sm:$0xf0]  ;;  %v3089_v33 = vor.u32 %v4243_v16, %v3086_v19 }
  0xde   :  { %2007 = vmatpush.bf16.msra.mxu2 %v3185_v60  ;;  %1976 = vmatmul.bf16.vlgmr.msrb.gmra.mxu3 %v4808_v18  ;;  %v1744_v34 = vadd.f32 %v1743_v27, %v1731_v51  ;;  %v2846_v60 = vld [vmem:[#allocation5 + $0x58] sm:$0xf0]  ;;  %v3217_v40 = vor.u32 %v4275_v20, %v3214_v21  ;;  %v4331_v45 = vld [vmem:[#allocation5 + $0x4ec] sm:$0xf] }
  0xdf   :  { %2020 = vmatpush.bf16.msra.mxu3 %v3313_v0  ;;  %v2974_v0 = vld [vmem:[#allocation5 + $0x158] sm:$0xf0]  ;;  %v2849_v7 = vor.u32 %v4183_v59, %v2846_v60  ;;  %v4395_v50 = vld [vmem:[#allocation5 + $0x6ec] sm:$0xf] }
  0xe0   :  { %1982 = vmatpush.bf16.msra.mxu0 %v2913_v9  ;;  %v1756_v62 = vpop.f32.mrf.mxu2  ;;  %v2942_v36 = vld [vmem:[#allocation5 + $0x118] sm:$0xf0]  ;;  %v4427_v53 = vld [vmem:[#allocation5 + $0x7ec] sm:$0xf] }
  0xe1   :  { %1995 = vmatpush.bf16.msra.mxu1 %v3041_v25  ;;  %v1757_v3 = vadd.f32 %v1756_v62, %v1744_v34  ;;  %v2977_v25 = vor.u32 %v4215_v61, %v2974_v0  ;;  %v3070_v41 = vld [vmem:[#allocation5 + $0x218] sm:$0xf0]  ;;  %v2945_v27 = vor.u32 %v4207_v35, %v2942_v36  ;;  %v4391_v61 = vld [vmem:[#allocation5 + $0x6cc] sm:$0xf] }
  0xe2   :  { %2008 = vmatpush.bf16.msra.mxu2 %v3169_v11  ;;  %v3105_v11 = vor.u32 %v4247_v1, %v3102_v2  ;;  %v3198_v43 = vld [vmem:[#allocation5 + $0x318] sm:$0xf0]  ;;  %v4355_v6 = vld [vmem:[#allocation5 + $0x5ac] sm:$0xf] }
  0xe3   :  { %2021 = vmatpush.bf16.msra.mxu3 %v3297_v32  ;;  %v1769_v4 = vpop.f32.mrf.mxu3  ;;  %v1732_v9 = vpop.f32.mrf.mxu0  ;;  %v3566_v49 = vld [vmem:[#allocation5 + $0x5f8] sm:$0xf0]  ;;  %v3201_v28 = vor.u32 %v4271_v42, %v3198_v43  ;;  %v4319_v21 = vld [vmem:[#allocation5 + $0x48c] sm:$0xf] }
  0xe4   :  { %1983 = vmatpush.bf16.msra.mxu0 %v2897_v23  ;;  %v4814_v8 = vadd.f32 %v1769_v4, %v1757_v3  ;;  %v1745_v32 = vpop.f32.mrf.mxu1  ;;  %v2833_v23 = vor.u32 %v4179_v12, %v2830_v13  ;;  %v3694_v51 = vld [vmem:[#allocation5 + $0x6f8] sm:$0xf0]  ;;  %v4323_v4 = vld [vmem:[#allocation5 + $0x4ac] sm:$0xf]  ;;  %v4532_v9 = vld [vmem:[#allocation1 + $0x12] sm:$0xff] }
  0xe5   :  { %1996 = vmatpush.bf16.msra.mxu1 %v3025_v26  ;;  %v2814_v26 = vld [vmem:[#allocation5 + $0x18] sm:$0xf0]  ;;  %v3697_v34 = vor.u32 %v4395_v50, %v3694_v51  ;;  %v4419_v13 = vld [vmem:[#allocation5 + $0x7ac] sm:$0xf]  ;;  %v4533_v32 = vld [vmem:[#allocation1] sm:$0xff] }
  0xe6   :  { %2009 = vmatpush.bf16.msra.mxu2 %v3153_v30  ;;  %v2961_v30 = vor.u32 %v4211_v14, %v2958_v38  ;;  %v2817_v48 = vor.u32 %v4175_v24, %v2814_v26  ;;  %v3822_v54 = vld [vmem:[#allocation5 + $0x7f8] sm:$0xf0]  ;;  %v4351_v24 = vld [vmem:[#allocation5 + $0x58c] sm:$0xf]  ;;  %vm2085_vm0 = vcmp.gt.f32.partialorder %v4814_v8, 0.0 }
  0xe7   :  { %2022 = vmatpush.bf16.msra.mxu3 %v3281_v37  ;;  %v4239_v37 = vld [vmem:[#allocation5 + $0x20c] sm:$0xf]  ;;  %v3825_v59 = vor.u32 %v4427_v53, %v3822_v54  ;;  %v3550_v60 = vld [vmem:[#allocation5 + $0x5d8] sm:$0xf0]  ;;  %vm4834_vm2 = vmpackc.low %vm2085_vm0, %vm2085_vm0 }
  0xe8   :  { %1984 = vmatpush.bf16.msra.mxu0 %v2881_v44  ;;  %v1758_v39 = vpop.f32.mrf.mxu2  ;;  %v3678_v62 = vld [vmem:[#allocation5 + $0x6d8] sm:$0xf0]  ;;  %v4415_v36 = vld [vmem:[#allocation5 + $0x78c] sm:$0xf] }
  0xe9   :  { %1997 = vmatpush.bf16.msra.mxu1 %v3009_v46  ;;  %v3438_v46 = vld [vmem:[#allocation5 + $0x4f8] sm:$0xf0]  ;;  %v3681_v3 = vor.u32 %v4391_v61, %v3678_v62  ;;  %v4315_v43 = vld [vmem:[#allocation5 + $0x46c] sm:$0xf] }
  0xea   :  { %2010 = vmatpush.bf16.msra.mxu2 %v3137_v47  ;;  %v4363_v47 = vld [vmem:[#allocation5 + $0x5ec] sm:$0xf]  ;;  %v3441_v29 = vor.u32 %v4331_v45, %v3438_v46  ;;  %v3806_v0 = vld [vmem:[#allocation5 + $0x7d8] sm:$0xf0] }
  0xeb   :  { %2023 = vmatpush.bf16.msra.mxu3 %v3265_v52  ;;  %v1771_v44 = vpop.f32.mrf.mxu3  ;;  %v3073_v52 = vor.u32 %v4239_v37, %v3070_v41  ;;  %v3569_v55 = vor.u32 %v4363_v47, %v3566_v49  ;;  %v3406_v5 = vld [vmem:[#allocation5 + $0x4b8] sm:$0xf0]  ;;  %v4347_v45 = vld [vmem:[#allocation5 + $0x56c] sm:$0xf] }
  0xec   :  { %1985 = vmatpush.bf16.msra.mxu0 %v2865_v56  ;;  %v4327_v56 = vld [vmem:[#allocation5 + $0x4cc] sm:$0xf]  ;;  %v3662_v12 = vld [vmem:[#allocation5 + $0x6b8] sm:$0xf0]  ;;  %v3409_v38 = vor.u32 %v4323_v4, %v3406_v5 }
  0xed   :  { %1998 = vmatpush.bf16.msra.mxu1 %v2993_v57  ;;  %v3422_v57 = vld [vmem:[#allocation5 + $0x4d8] sm:$0xf0]  ;;  %v4379_v49 = vld [vmem:[#allocation5 + $0x66c] sm:$0xf] }
  0xee   :  { %2011 = vmatpush.bf16.msra.mxu2 %v3121_v58  ;;  %v4359_v58 = vld [vmem:[#allocation5 + $0x5cc] sm:$0xf]  ;;  %v3425_v1 = vor.u32 %v4327_v56, %v3422_v57  ;;  %v3790_v14 = vld [vmem:[#allocation5 + $0x7b8] sm:$0xf0] }
  0xef   :  { %2024 = vmatpush.bf16.msra.mxu3 %v3249_v63  ;;  %v4423_v63 = vld [vmem:[#allocation5 + $0x7cc] sm:$0xf]  ;;  %v3553_v2 = vor.u32 %v4359_v58, %v3550_v60  ;;  %v4535_v16 = vld [vmem:[#allocation1 + $0x9] sm:$0xff]  ;;  %v3793_v26 = vor.u32 %v4419_v13, %v3790_v14  ;;  %v1662_v14 = vperm.slane %v4799_v10, 1 }
  0xf0   :  { %1986 = vmatpush.bf16.msra.mxu0 %v2849_v7  ;;  %v3809_v7 = vor.u32 %v4423_v63, %v3806_v0  ;;  %v3646_v35 = vld [vmem:[#allocation5 + $0x698] sm:$0xf0]  ;;  %v4411_v51 = vld [vmem:[#allocation5 + $0x76c] sm:$0xf] }
  0xf1   :  { %1999 = vmatpush.bf16.msra.mxu1 %v2977_v25  ;;  %v3534_v25 = vld [vmem:[#allocation5 + $0x5b8] sm:$0xf0]  ;;  %v4375_v58 = vld [vmem:[#allocation5 + $0x64c] sm:$0xf] }
  0xf2   :  { %2012 = vmatpush.bf16.msra.mxu2 %v3105_v11  ;;  %v4387_v11 = vld [vmem:[#allocation5 + $0x6ac] sm:$0xf]  ;;  %v3537_v19 = vor.u32 %v4355_v6, %v3534_v25  ;;  %v3774_v37 = vld [vmem:[#allocation5 + $0x798] sm:$0xf0] }
  0xf3   :  { %2025 = vmatpush.bf16.msra.mxu3 %v3233_v15  ;;  %v4534_v15 = vld [vmem:[#allocation1 + $0x1b] sm:$0xff]  ;;  %v3665_v20 = vor.u32 %v4387_v11, %v3662_v12  ;;  %v3374_v44 = vld [vmem:[#allocation5 + $0x478] sm:$0xf0]  ;;  %v3777_v47 = vor.u32 %v4415_v36, %v3774_v37  ;;  %v3888_v37 = vld [vmem:[#allocation8 + $0x70] sm:$0xf] }
  0xf4   :  { %1987 = vmatpush.bf16.msra.mxu0 %v2833_v23  ;;  %v3390_v23 = vld [vmem:[#allocation5 + $0x498] sm:$0xf0]  ;;  %v4407_v61 = vld [vmem:[#allocation5 + $0x74c] sm:$0xf] }
  0xf5   :  { %2000 = vmatpush.bf16.msra.mxu1 %v2961_v30  ;;  %v3518_v30 = vld [vmem:[#allocation5 + $0x598] sm:$0xf0]  ;;  %v3393_v39 = vor.u32 %v4319_v21, %v3390_v23  ;;  %v4339_v5 = vld [vmem:[#allocation5 + $0x52c] sm:$0xf] }
  0xf6   :  { %2013 = vmatpush.bf16.msra.mxu2 %v3089_v33  ;;  %v4383_v33 = vld [vmem:[#allocation5 + $0x68c] sm:$0xf]  ;;  %v3521_v41 = vor.u32 %v4351_v24, %v3518_v30  ;;  %v3630_v50 = vld [vmem:[#allocation5 + $0x678] sm:$0xf0] }
  0xf7   :  { %2026 = vmatpush.bf16.msra.mxu3 %v3217_v40  ;;  %v3649_v42 = vor.u32 %v4383_v33, %v3646_v35  ;;  %v3633_v54 = vor.u32 %v4379_v49, %v3630_v50  ;;  %v3486_v57 = vld [vmem:[#allocation5 + $0x558] sm:$0xf0]  ;;  %v4371_v25 = vld [vmem:[#allocation5 + $0x62c] sm:$0xf]  ;;  %v3880_v50 = vld [vmem:[#allocation8 + $0x60] sm:$0xf] }
  0xf8   :  { %1988 = vmatpush.bf16.msra.mxu0 %v2817_v48  ;;  %v4816_v40 = vpop.f32.mrf.mxu0  ;;  %v3502_v48 = vld [vmem:[#allocation5 + $0x578] sm:$0xf0]  ;;  %v4403_v12 = vld [vmem:[#allocation5 + $0x72c] sm:$0xf] }
  0xf9   :  { %2001 = vmatpush.bf16.msra.mxu1 %v2945_v27  ;;  %v4818_v46 = vpop.f32.mrf.mxu1  ;;  %v3758_v27 = vld [vmem:[#allocation5 + $0x778] sm:$0xf0]  ;;  %v3505_v53 = vor.u32 %v4347_v45, %v3502_v48  ;;  %v4399_v33 = vld [vmem:[#allocation5 + $0x70c] sm:$0xf] }
  0xfa   :  { %2014 = vmatpush.bf16.msra.mxu2 %v3073_v52  ;;  %v3377_v52 = vor.u32 %v4315_v43, %v3374_v44  ;;  %v3761_v56 = vor.u32 %v4411_v51, %v3758_v27  ;;  %v3742_v62 = vld [vmem:[#allocation5 + $0x758] sm:$0xf0]  ;;  %v4443_v51 = vld [vmem:[#allocation8 + $0x64] sm:$0xf0] }
  0xfb   :  { %2027 = vmatpush.bf16.msra.mxu3 %v3201_v28  ;;  %1989 = vmatmul.bf16.vlgmr.msra.gmra.mxu0 %v4533_v32  ;;  %v4311_v28 = vld [vmem:[#allocation5 + $0x44c] sm:$0xf]  ;;  %v3342_v4 = vld [vmem:[#allocation5 + $0x438] sm:$0xf0] }
  0xfc   :  { %2033 = vmatpush.bf16.msrb.mxu0 %v3441_v29  ;;  %2002 = vmatmul.bf16.vlgmr.msra.gmra.mxu1 %v4535_v16  ;;  %v3358_v29 = vld [vmem:[#allocation5 + $0x458] sm:$0xf0] }
  0xfd   :  { %2046 = vmatpush.bf16.msrb.mxu1 %v3569_v55  ;;  %2015 = vmatmul.bf16.vlgmr.msra.gmra.mxu2 %v4532_v9  ;;  %v4343_v55 = vld [vmem:[#allocation5 + $0x54c] sm:$0xf]  ;;  %v3361_v63 = vor.u32 %v4311_v28, %v3358_v29  ;;  %v3470_v9 = vld [vmem:[#allocation5 + $0x538] sm:$0xf0]  ;;  %v3872_v29 = vld [vmem:[#allocation8 + $0x50] sm:$0xf] }
  0xfe   :  { %2059 = vmatpush.bf16.msrb.mxu2 %v3697_v34  ;;  %2028 = vmatmul.bf16.vlgmr.msra.gmra.mxu3 %v4534_v15  ;;  %v3598_v11 = vld [vmem:[#allocation5 + $0x638] sm:$0xf0]  ;;  %v4303_v15 = vld [vmem:[#allocation5 + $0x40c] sm:$0xf] }
  0xff   :  { %2072 = vmatpush.bf16.msrb.mxu3 %v3825_v59  ;;  %v3614_v59 = vld [vmem:[#allocation5 + $0x658] sm:$0xf0]  ;;  %v3601_v16 = vor.u32 %v4371_v25, %v3598_v11  ;;  %v3920_v25 = vld [vmem:[#allocation8 + $0xb0] sm:$0xf] }
 0x100   :  { %2034 = vmatpush.bf16.msrb.mxu0 %v3425_v1  ;;  %v4820_v34 = vpop.f32.mrf.mxu2  ;;  %v1784_v0 = vpop.f32.mrf.mxu0  ;;  %v3489_v1 = vor.u32 %v4343_v55, %v3486_v57  ;;  %v3726_v13 = vld [vmem:[#allocation5 + $0x738] sm:$0xf0] }
 0x101   :  { %2047 = vmatpush.bf16.msrb.mxu1 %v3553_v2  ;;  %v4822_v60 = vpop.f32.mrf.mxu3  ;;  %v3617_v2 = vor.u32 %v4375_v58, %v3614_v59  ;;  %v1797_v6 = vpop.f32.mrf.mxu1  ;;  %v3454_v21 = vld [vmem:[#allocation5 + $0x518] sm:$0xf0]  ;;  %v3729_v24 = vor.u32 %v4403_v12, %v3726_v13  ;;  %v4016_v58 = vld [vmem:[#allocation8 + $0x170] sm:$0xf]  ;;  %v3928_v0 = vld [vmem:[#allocation8 + $0xc0] sm:$0xf] }
 0x102   :  { %2060 = vmatpush.bf16.msrb.mxu2 %v3681_v3  ;;  %v4307_v3 = vld [vmem:[#allocation5 + $0x42c] sm:$0xf]  ;;  %v3582_v30 = vld [vmem:[#allocation5 + $0x618] sm:$0xf0]  ;;  %v4000_v12 = vld [vmem:[#allocation8 + $0x150] sm:$0xf] }
 0x103   :  { %2073 = vmatpush.bf16.msrb.mxu3 %v3809_v7  ;;  %v3745_v7 = vor.u32 %v4407_v61, %v3742_v62  ;;  %v3345_v32 = vor.u32 %v4307_v3, %v3342_v4  ;;  %v3710_v36 = vld [vmem:[#allocation5 + $0x718] sm:$0xf0]  ;;  %v3864_v62 = vld [vmem:[#allocation8 + $0x40] sm:$0xf]  ;;  %v4475_v3 = vld [vmem:[#allocation8 + $0x164] sm:$0xf0] }
 0x104   :  { %2035 = vmatpush.bf16.msrb.mxu0 %v3409_v38  ;;  %v3473_v38 = vor.u32 %v4339_v5, %v3470_v9  ;;  %v4445_v10 = vld [vmem:[#allocation8 + $0x74] sm:$0xf0]  ;;  %v3856_v4 = vld [vmem:[#allocation8 + $0x30] sm:$0xf] }
 0x105   :  { %2048 = vmatpush.bf16.msrb.mxu1 %v3537_v19  ;;  %v3326_v19 = vld [vmem:[#allocation5 + $0x418] sm:$0xf0]  ;;  %v3889_v48 = vor.u32 %v4445_v10, %v3888_v37  ;;  %v3840_v37 = vld [vmem:[#allocation8 + $0x10] sm:$0xf] }
 0x106   :  { %2061 = vmatpush.bf16.msrb.mxu2 %v3665_v20  ;;  %v4335_v20 = vld [vmem:[#allocation5 + $0x50c] sm:$0xf]  ;;  %v4461_v43 = vld [vmem:[#allocation8 + $0xf4] sm:$0xf0] }
 0x107   :  { %2074 = vmatpush.bf16.msrb.mxu3 %v3793_v26  ;;  %v4367_v26 = vld [vmem:[#allocation5 + $0x60c] sm:$0xf]  ;;  %v3457_v44 = vor.u32 %v4335_v20, %v3454_v21  ;;  %v4441_v55 = vld [vmem:[#allocation8 + $0x54] sm:$0xf0]  ;;  %v3912_v20 = vld [vmem:[#allocation8 + $0xa0] sm:$0xf] }
 0x108   :  { %2036 = vmatpush.bf16.msrb.mxu0 %v3393_v39  ;;  %v1810_v23 = vpop.f32.mrf.mxu2  ;;  %v1783_v39 = vadd.f32 %v4816_v40, %v1662_v14  ;;  %v3585_v45 = vor.u32 %v4367_v26, %v3582_v30  ;;  %v3881_v40 = vor.u32 %v4443_v51, %v3880_v50  ;;  %v3873_v57 = vor.u32 %v4441_v55, %v3872_v29  ;;  %v4477_v59 = vld [vmem:[#allocation8 + $0x174] sm:$0xf0]  ;;  %v4451_v21 = vld [vmem:[#allocation8 + $0xa4] sm:$0xf0]  ;;  %v3992_v30 = vld [vmem:[#allocation8 + $0x140] sm:$0xf] }
 0x109   :  { %2049 = vmatpush.bf16.msrb.mxu1 %v3521_v41  ;;  %v1823_v35 = vpop.f32.mrf.mxu3  ;;  %v3329_v41 = vor.u32 %v4303_v15, %v3326_v19  ;;  %v4437_v5 = vld [vmem:[#allocation8 + $0x34] sm:$0xf0]  ;;  %v4435_v15 = vld [vmem:[#allocation8 + $0x24] sm:$0xf0]  ;;  %v3832_v50 = vld [vmem:[#allocation8] sm:$0xf] }
 0x10a   :  { %2062 = vmatpush.bf16.msrb.mxu2 %v3649_v42  ;;  %v3952_v42 = vld [vmem:[#allocation8 + $0xf0] sm:$0xf]  ;;  %v1796_v27 = vadd.f32 %v4818_v46, %v1783_v39  ;;  %v3857_v11 = vor.u32 %v4437_v5, %v3856_v4  ;;  %v4473_v13 = vld [vmem:[#allocation8 + $0x154] sm:$0xf0]  ;;  %v3913_v35 = vor.u32 %v4451_v21, %v3912_v20  ;;  %v4431_v51 = vld [vmem:[#allocation8 + $0x4] sm:$0xf0] }
 0x10b   :  { %2075 = vmatpush.bf16.msrb.mxu3 %v3777_v47  ;;  %v3713_v47 = vor.u32 %v4399_v33, %v3710_v36  ;;  %v3953_v49 = vor.u32 %v4461_v43, %v3952_v42  ;;  %v3936_v46 = vld [vmem:[#allocation8 + $0xd0] sm:$0xf]  ;;  %v4001_v19 = vor.u32 %v4473_v13, %v4000_v12  ;;  %v4471_v33 = vld [vmem:[#allocation8 + $0x144] sm:$0xf0]  ;;  %v4433_v10 = vld [vmem:[#allocation8 + $0x14] sm:$0xf0] }
 0x10c   :  { %2037 = vmatpush.bf16.msrb.mxu0 %v3377_v52  ;;  %v3944_v52 = vld [vmem:[#allocation8 + $0xe0] sm:$0xf]  ;;  %v1809_v28 = vadd.f32 %v4820_v34, %v1796_v27  ;;  %v4439_v34 = vld [vmem:[#allocation8 + $0x44] sm:$0xf0]  ;;  %v3904_v42 = vld [vmem:[#allocation8 + $0x90] sm:$0xf] }
 0x10d   :  { %2050 = vmatpush.bf16.msrb.mxu1 %v3505_v53  ;;  %v4459_v53 = vld [vmem:[#allocation8 + $0xe4] sm:$0xf0]  ;;  %v4449_v43 = vld [vmem:[#allocation8 + $0x94] sm:$0xf0]  ;;  %v3896_v27 = vld [vmem:[#allocation8 + $0x80] sm:$0xf] }
 0x10e   :  { %2063 = vmatpush.bf16.msrb.mxu2 %v3633_v54  ;;  %v3945_v54 = vor.u32 %v4459_v53, %v3944_v52  ;;  %v4460_v55 = vld [vmem:[#allocation8 + $0xf4] sm:$0xf]  ;;  %v3960_v4 = vld [vmem:[#allocation8 + $0x100] sm:$0xf]  ;;  %v4463_v5 = vld [vmem:[#allocation8 + $0x104] sm:$0xf0] }
 0x10f   :  { %2076 = vmatpush.bf16.msrb.mxu3 %v3761_v56  ;;  %v4457_v56 = vld [vmem:[#allocation8 + $0xd4] sm:$0xf0]  ;;  %v4456_v12 = vld [vmem:[#allocation8 + $0xd4] sm:$0xf]  ;;  %v3938_v13 = vld [vmem:[#allocation8 + $0xd8] sm:$0xf0] }
 0x110   :  { %2038 = vmatpush.bf16.msrb.mxu0 %v3361_v63  ;;  %v3937_v61 = vor.u32 %v4457_v56, %v3936_v46  ;;  %v4017_v63 = vor.u32 %v4477_v59, %v4016_v58  ;;  %v3954_v46 = vld [vmem:[#allocation8 + $0xf8] sm:$0xf0]  ;;  %v3833_v56 = vor.u32 %v4431_v51, %v3832_v50  ;;  %v4467_v58 = vld [vmem:[#allocation8 + $0x124] sm:$0xf0]  ;;  %v4454_v20 = vld [vmem:[#allocation8 + $0xc4] sm:$0xf] }
 0x111   :  { %2051 = vmatpush.bf16.msrb.mxu1 %v3489_v1  ;;  %v4455_v1 = vld [vmem:[#allocation8 + $0xc4] sm:$0xf0]  ;;  %v3930_v21 = vld [vmem:[#allocation8 + $0xc8] sm:$0xf0]  ;;  %v4450_v50 = vld [vmem:[#allocation8 + $0xa4] sm:$0xf] }
 0x112   :  { %2064 = vmatpush.bf16.msrb.mxu2 %v3617_v2  ;;  %v4008_v2 = vld [vmem:[#allocation8 + $0x160] sm:$0xf]  ;;  %v3914_v51 = vld [vmem:[#allocation8 + $0xa8] sm:$0xf0] }
 0x113   :  { %2077 = vmatpush.bf16.msrb.mxu3 %v3745_v7  ;;  %v4009_v9 = vor.u32 %v4475_v3, %v4008_v2  ;;  %v4465_v2 = vld [vmem:[#allocation8 + $0x114] sm:$0xf0] }
 0x114   :  { %2039 = vmatpush.bf16.msrb.mxu0 %v3345_v32  ;;  %v3848_v32 = vld [vmem:[#allocation8 + $0x20] sm:$0xf] }
 0x115   :  { %2052 = vmatpush.bf16.msrb.mxu1 %v3473_v38 }
 0x116   :  { %2065 = vmatpush.bf16.msrb.mxu2 %v3601_v16 }
 0x117   :  { %2078 = vmatpush.bf16.msrb.mxu3 %v3729_v24  ;;  %v3849_v24 = vor.u32 %v4435_v15, %v3848_v32 }
 0x118   :  { %2040 = vmatpush.bf16.msrb.mxu0 %v3329_v41  ;;  %v3993_v41 = vor.u32 %v4471_v33, %v3992_v30  ;;  %v3933_v30 = vor.u32 %v4454_v20, %v3930_v21  ;;  %v4436_v33 = vld [vmem:[#allocation8 + $0x34] sm:$0xf]  ;;  %v4462_v20 = vld [vmem:[#allocation8 + $0x104] sm:$0xf]  ;;  %v3962_v21 = vld [vmem:[#allocation8 + $0x108] sm:$0xf0] }
 0x119   :  { %2053 = vmatpush.bf16.msrb.mxu1 %v3457_v44  ;;  %v1847_v7 = vpop.f32.mrf.mxu1  ;;  %v3841_v44 = vor.u32 %v4433_v10, %v3840_v37  ;;  %v4452_v10 = vld [vmem:[#allocation8 + $0xb4] sm:$0xf] }
 0x11a   :  { %2066 = vmatpush.bf16.msrb.mxu2 %v3585_v45  ;;  %v3984_v45 = vld [vmem:[#allocation8 + $0x130] sm:$0xf] }
 0x11b   :  { %2079 = vmatpush.bf16.msrb.mxu3 %v3713_v47  ;;  %2041 = vmatmul.bf16.vlgmr.msrb.gmra.mxu0 %v4805_v17  ;;  %v1822_v17 = vadd.f32 %v4822_v60, %v1809_v28  ;;  %v4453_v60 = vld [vmem:[#allocation8 + $0xb4] sm:$0xf0]  ;;  %v3890_v28 = vld [vmem:[#allocation8 + $0x78] sm:$0xf0] }
 0x11c   :  { %2491 = vmatpush.bf16.msra.mxu0 %v3889_v48  ;;  %2054 = vmatmul.bf16.vlgmr.msrb.gmra.mxu1 %v4811_v22  ;;  %v1834_v22 = vpop.f32.mrf.mxu0  ;;  %v3921_v14 = vor.u32 %v4453_v60, %v3920_v25  ;;  %v4469_v47 = vld [vmem:[#allocation8 + $0x134] sm:$0xf0]  ;;  %v3905_v48 = vor.u32 %v4449_v43, %v3904_v42  ;;  %v3874_v25 = vld [vmem:[#allocation8 + $0x58] sm:$0xf0]  ;;  %v4472_v43 = vld [vmem:[#allocation8 + $0x154] sm:$0xf] }
 0x11d   :  { %2504 = vmatpush.bf16.msra.mxu1 %v3953_v49  ;;  %2067 = vmatmul.bf16.vlgmr.msrb.gmra.mxu2 %v4802_v31  ;;  %v3865_v31 = vor.u32 %v4439_v34, %v3864_v62  ;;  %v1835_v6 = vadd.f32 %v1834_v22, %v1822_v17  ;;  %v3985_v53 = vor.u32 %v4469_v47, %v3984_v45  ;;  %v4442_v34 = vld [vmem:[#allocation8 + $0x64] sm:$0xf]  ;;  %v3968_v22 = vld [vmem:[#allocation8 + $0x110] sm:$0xf]  ;;  %v4018_v60 = vld [vmem:[#allocation8 + $0x178] sm:$0xf0] }
 0x11e   :  { %2080 = vmatmul.bf16.vlgmr.msrb.gmra.mxu3 %v4808_v18  ;;  %2517 = vmatpush.bf16.msra.mxu2 %v4017_v63  ;;  %v3929_v18 = vor.u32 %v4455_v1, %v3928_v0  ;;  %v3957_v62 = vor.u32 %v4460_v55, %v3954_v46  ;;  %v3882_v63 = vld [vmem:[#allocation8 + $0x68] sm:$0xf0]  ;;  %v4458_v1 = vld [vmem:[#allocation8 + $0xe4] sm:$0xf]  ;;  %v3842_v55 = vld [vmem:[#allocation8 + $0x18] sm:$0xf0] }
 0x11f   :  { %v1848_v38 = vadd.f32 %v1847_v7, %v1835_v6  ;;  %v3885_v3 = vor.u32 %v4442_v34, %v3882_v63  ;;  %v4476_v6 = vld [vmem:[#allocation8 + $0x174] sm:$0xf]  ;;  %v4434_v47 = vld [vmem:[#allocation8 + $0x24] sm:$0xf]  ;;  %v4848_v34 = vld [vmem:[#allocation7] sm:$0xf] }
 0x120   :  { %2492 = vmatpush.bf16.msra.mxu0 %v3881_v40  ;;  %v1860_v16 = vpop.f32.mrf.mxu2  ;;  %v4447_v40 = vld [vmem:[#allocation8 + $0x84] sm:$0xf0]  ;;  %v4021_v32 = vor.u32 %v4476_v6, %v4018_v60  ;;  %v1663_v63 = vperm.slane %v4848_v34, 2  ;;  %v3898_v6 = vld [vmem:[#allocation8 + $0x88] sm:$0xf0] }
 0x121   :  { %2505 = vmatpush.bf16.msra.mxu1 %v3945_v54  ;;  %v1873_v23 = vpop.f32.mrf.mxu3  ;;  %v1861_v36 = vadd.f32 %v1860_v16, %v1848_v38  ;;  %v1849_v39 = vpop.f32.mrf.mxu1  ;;  %v4444_v54 = vld [vmem:[#allocation8 + $0x74] sm:$0xf]  ;;  %v3897_v59 = vor.u32 %v4447_v40, %v3896_v27  ;;  %v3941_v38 = vor.u32 %v4456_v12, %v3938_v13  ;;  %v4438_v16 = vld [vmem:[#allocation8 + $0x44] sm:$0xf] }
 0x122   :  { %2518 = vmatpush.bf16.msra.mxu2 %v4009_v9  ;;  %v4440_v9 = vld [vmem:[#allocation8 + $0x54] sm:$0xf]  ;;  %v3922_v39 = vld [vmem:[#allocation8 + $0xb8] sm:$0xf0]  ;;  %v4470_v40 = vld [vmem:[#allocation8 + $0x144] sm:$0xf] }
 0x123   :  { %v1874_v49 = vadd.f32 %v1873_v23, %v1861_v36  ;;  %v3877_v15 = vor.u32 %v4440_v9, %v3874_v25  ;;  %v3925_v45 = vor.u32 %v4452_v10, %v3922_v39  ;;  %v4493_v9 = vld [vmem:[#allocation8 + $0x1f4] sm:$0xf0] }
 0x124   :  { %2493 = vmatpush.bf16.msra.mxu0 %v3873_v57  ;;  %v1836_v26 = vpop.f32.mrf.mxu0  ;;  %v3976_v57 = vld [vmem:[#allocation8 + $0x120] sm:$0xf] }
 0x125   :  { %2506 = vmatpush.bf16.msra.mxu1 %v3937_v61  ;;  %vm2086_vm1 = vcmp.gt.f32.partialorder %v1874_v49, 0.0  ;;  %v3893_v61 = vor.u32 %v4444_v54, %v3890_v28  ;;  %v3977_v17 = vor.u32 %v4467_v58, %v3976_v57  ;;  %v4010_v26 = vld [vmem:[#allocation8 + $0x168] sm:$0xf0]  ;;  %v3917_v28 = vor.u32 %v4450_v50, %v3914_v51  ;;  %v4448_v57 = vld [vmem:[#allocation8 + $0x94] sm:$0xf] }
 0x126   :  { %2519 = vmatpush.bf16.msra.mxu2 %v4001_v19  ;;  %vm4838_vm3 = vmpackc.low %vm2086_vm1, %vm2086_vm1  ;;  %v3866_v19 = vld [vmem:[#allocation8 + $0x48] sm:$0xf0]  ;;  %v3906_v58 = vld [vmem:[#allocation8 + $0x98] sm:$0xf0] }
 0x127   :  { %v3869_v23 = vor.u32 %v4438_v16, %v3866_v19  ;;  %v3994_v54 = vld [vmem:[#allocation8 + $0x148] sm:$0xf0]  ;;  %v4485_v50 = vld [vmem:[#allocation8 + $0x1b4] sm:$0xf0] }
 0x128   :  { %2494 = vmatpush.bf16.msra.mxu0 %v3865_v31  ;;  %v1862_v52 = vpop.f32.mrf.mxu2  ;;  %v3946_v31 = vld [vmem:[#allocation8 + $0xe8] sm:$0xf0] }
 0x129   :  { %2507 = vmatpush.bf16.msra.mxu1 %v3929_v18  ;;  %v1875_v29 = vpop.f32.mrf.mxu3  ;;  %v3969_v18 = vor.u32 %v4465_v2, %v3968_v22  ;;  %v3949_v7 = vor.u32 %v4458_v1, %v3946_v31  ;;  %v4466_v31 = vld [vmem:[#allocation8 + $0x124] sm:$0xf]  ;;  %v3978_v22 = vld [vmem:[#allocation8 + $0x128] sm:$0xf0]  ;;  %v3909_v2 = vor.u32 %v4448_v57, %v3906_v58 }
 0x12a   :  { %2520 = vmatpush.bf16.msra.mxu2 %v3993_v41  ;;  %v4432_v29 = vld [vmem:[#allocation8 + $0x14] sm:$0xf]  ;;  %v3981_v60 = vor.u32 %v4466_v31, %v3978_v22  ;;  %v4490_v31 = vld [vmem:[#allocation8 + $0x1e4] sm:$0xf]  ;;  %v4074_v22 = vld [vmem:[#allocation8 + $0x1e8] sm:$0xf0] }
 0x12c   :  { %2495 = vmatpush.bf16.msra.mxu0 %v3857_v11  ;;  %v4700_v11 = vmov 1.0|1.0  }
 0x12d   :  { %2508 = vmatpush.bf16.msra.mxu1 %v3921_v14  ;;  %v3961_v14 = vor.u32 %v4463_v5, %v3960_v4  ;;  %v4080_v4 = vld [vmem:[#allocation8 + $0x1f0] sm:$0xf]  ;;  %v4446_v5 = vld [vmem:[#allocation8 + $0x84] sm:$0xf] }
 0x12e   :  { %2521 = vmatpush.bf16.msra.mxu2 %v3985_v53  ;;  %v4081_v12 = vor.u32 %v4493_v9, %v4080_v4  ;;  %v4488_v4 = vld [vmem:[#allocation8 + $0x1d4] sm:$0xf]  ;;  %v4486_v9 = vld [vmem:[#allocation8 + $0x1c4] sm:$0xf] }
 0x130   :  { %2496 = vmatpush.bf16.msra.mxu0 %v3849_v24  ;;  %v4474_v24 = vld [vmem:[#allocation8 + $0x164] sm:$0xf]  ;;  %2530 = vmatpush.bf16.msra.mxu3 %v4081_v12 }
 0x131   :  { %2509 = vmatpush.bf16.msra.mxu1 %v3913_v35  ;;  %v3858_v35 = vld [vmem:[#allocation8 + $0x38] sm:$0xf0]  ;;  %v4013_v37 = vor.u32 %v4474_v24, %v4010_v26  ;;  %v4072_v26 = vld [vmem:[#allocation8 + $0x1e0] sm:$0xf] }
 0x132   :  { %2522 = vmatpush.bf16.msra.mxu2 %v3977_v17  ;;  %v3861_v42 = vor.u32 %v4436_v33, %v3858_v35  ;;  %v3986_v17 = vld [vmem:[#allocation8 + $0x138] sm:$0xf0]  ;;  %v4064_v33 = vld [vmem:[#allocation8 + $0x1d0] sm:$0xf] }
 0x134   :  { %2497 = vmatpush.bf16.msra.mxu0 %v3841_v44  ;;  %v4002_v44 = vld [vmem:[#allocation8 + $0x158] sm:$0xf0] }
 0x135   :  { %2510 = vmatpush.bf16.msra.mxu1 %v3905_v48  ;;  %v3850_v48 = vld [vmem:[#allocation8 + $0x28] sm:$0xf0]  ;;  %v4005_v49 = vor.u32 %v4472_v43, %v4002_v44  ;;  %v4487_v43 = vld [vmem:[#allocation8 + $0x1c4] sm:$0xf0] }
 0x136   :  { %2523 = vmatpush.bf16.msra.mxu2 %v3969_v18  ;;  %v3853_v53 = vor.u32 %v4434_v47, %v3850_v48  ;;  %v3834_v18 = vld [vmem:[#allocation8 + $0x8] sm:$0xf0] }
 0x138   :  { %2498 = vmatpush.bf16.msra.mxu0 %v3833_v56  ;;  %v1886_v36 = vpop.f32.mrf.mxu0  ;;  %v3997_v56 = vor.u32 %v4470_v40, %v3994_v54  ;;  %v4483_v40 = vld [vmem:[#allocation8 + $0x1a4] sm:$0xf0] }
 0x139   :  { %2511 = vmatpush.bf16.msra.mxu1 %v3897_v59  ;;  %v1899_v41 = vpop.f32.mrf.mxu1  ;;  %v1887_v13 = vadd.f32 %v1886_v36, %v1663_v63 }
 0x13a   :  { %2524 = vmatpush.bf16.msra.mxu2 %v3961_v14 }
 0x13b   :  { %4087 = vmatmul.msk.bf16.vlgmr.msra.gmra.mxu0 %vm4834_vm2, %v4700_v11  ;;  %v1900_v19 = vadd.f32 %v1899_v41, %v1887_v13 }
 0x13c   :  { %2543 = vmatpush.bf16.msrb.mxu0 %v3893_v61  ;;  %4089 = vmatmul.msk.bf16.vlgmr.msra.gmra.mxu1 %vm4838_vm3, %v4700_v11  ;;  %v4468_v61 = vld [vmem:[#allocation8 + $0x134] sm:$0xf] }
 0x13d   :  { %2556 = vmatpush.bf16.msrb.mxu1 %v3957_v62  ;;  %v3845_v62 = vor.u32 %v4432_v29, %v3842_v55  ;;  %v3989_v1 = vor.u32 %v4468_v61, %v3986_v17  ;;  %v4032_v55 = vld [vmem:[#allocation8 + $0x190] sm:$0xf]  ;;  %v4479_v61 = vld [vmem:[#allocation8 + $0x184] sm:$0xf0]  ;;  %v4492_v17 = vld [vmem:[#allocation8 + $0x1f4] sm:$0xf] }
 0x13e   :  { %2569 = vmatpush.bf16.msrb.mxu2 %v4021_v32  ;;  %v4464_v32 = vld [vmem:[#allocation8 + $0x114] sm:$0xf] }
 0x140   :  { %2544 = vmatpush.bf16.msrb.mxu0 %v3885_v3  ;;  %v1912_v27 = vpop.f32.mrf.mxu2  ;;  %v1888_v46 = vpop.f32.mrf.mxu0  ;;  %v4430_v3 = vld [vmem:[#allocation8 + $0x4] sm:$0xf] }
 0x141   :  { %2557 = vmatpush.bf16.msrb.mxu1 %v3949_v7  ;;  %v1925_v52 = vpop.f32.mrf.mxu3  ;;  %v1901_v59 = vpop.f32.mrf.mxu1  ;;  %v3837_v14 = vor.u32 %v4430_v3, %v3834_v18  ;;  %v1913_v24 = vadd.f32 %v1912_v27, %v1900_v19  ;;  %v4481_v46 = vld [vmem:[#allocation8 + $0x194] sm:$0xf0]  ;;  %v4482_v19 = vld [vmem:[#allocation8 + $0x1a4] sm:$0xf] }
 0x142   :  { %2570 = vmatpush.bf16.msrb.mxu2 %v4013_v37  ;;  %v4489_v37 = vld [vmem:[#allocation8 + $0x1d4] sm:$0xf0]  ;;  %v4033_v58 = vor.u32 %v4481_v46, %v4032_v55  ;;  %v4024_v59 = vld [vmem:[#allocation8 + $0x180] sm:$0xf] }
 0x143   :  { %v1926_v35 = vadd.f32 %v1925_v52, %v1913_v24  ;;  %v4065_v10 = vor.u32 %v4489_v37, %v4064_v33  ;;  %v4025_v63 = vor.u32 %v4479_v61, %v4024_v59  ;;  %v4480_v24 = vld [vmem:[#allocation8 + $0x194] sm:$0xf]  ;;  %v4026_v37 = vld [vmem:[#allocation8 + $0x188] sm:$0xf0] }
 0x144   :  { %2545 = vmatpush.bf16.msrb.mxu0 %v3877_v15  ;;  %v3970_v15 = vld [vmem:[#allocation8 + $0x118] sm:$0xf0] }
 0x145   :  { %2558 = vmatpush.bf16.msrb.mxu1 %v3941_v38  ;;  %v3901_v38 = vor.u32 %v4446_v5, %v3898_v6  ;;  %v3973_v16 = vor.u32 %v4464_v32, %v3970_v15  ;;  %v4066_v5 = vld [vmem:[#allocation8 + $0x1d8] sm:$0xf0]  ;;  %v4484_v32 = vld [vmem:[#allocation8 + $0x1b4] sm:$0xf] }
 0x146   :  { %2571 = vmatpush.bf16.msrb.mxu2 %v4005_v49  ;;  %v4048_v49 = vld [vmem:[#allocation8 + $0x1b0] sm:$0xf]  ;;  %v4069_v6 = vor.u32 %v4488_v4, %v4066_v5  ;;  %v4050_v15 = vld [vmem:[#allocation8 + $0x1b8] sm:$0xf0]  ;;  %v4498_v4 = vld [vmem:[#allocation10 + $0x20] sm:$0xff] }
 0x147   :  { %v4049_v51 = vor.u32 %v4485_v50, %v4048_v49  ;;  %v4497_v5 = vld [vmem:[#allocation10 + $0x18] sm:$0xff] }
 0x148   :  { %2546 = vmatpush.bf16.msrb.mxu0 %v3869_v23  ;;  %v1914_v7 = vpop.f32.mrf.mxu2  ;;  %v3965_v23 = vor.u32 %v4462_v20, %v3962_v21  ;;  %v4042_v20 = vld [vmem:[#allocation8 + $0x1a8] sm:$0xf0] }
 0x149   :  { %2559 = vmatpush.bf16.msrb.mxu1 %v3933_v30  ;;  %v1927_v25 = vpop.f32.mrf.mxu3  ;;  %v4491_v30 = vld [vmem:[#allocation8 + $0x1e4] sm:$0xf0] }
 0x14a   :  { %2572 = vmatpush.bf16.msrb.mxu2 %v3997_v56  ;;  %v4073_v36 = vor.u32 %v4491_v30, %v4072_v26  ;;  %v4058_v25 = vld [vmem:[#allocation8 + $0x1c8] sm:$0xf0]  ;;  %v4034_v26 = vld [vmem:[#allocation8 + $0x198] sm:$0xf0] }
 0x14b   :  { %v4061_v12 = vor.u32 %v4486_v9, %v4058_v25  ;;  %v4495_v9 = vld [vmem:[#allocation10 + $0x8] sm:$0xff] }
 0x14c   :  { %2547 = vmatpush.bf16.msrb.mxu0 %v3861_v42  ;;  %2531 = vmatpush.bf16.msra.mxu3 %v4073_v36  ;;  %v4056_v42 = vld [vmem:[#allocation8 + $0x1c0] sm:$0xf]  ;;  %v4478_v36 = vld [vmem:[#allocation8 + $0x184] sm:$0xf] }
 0x14d   :  { %2560 = vmatpush.bf16.msrb.mxu1 %v3925_v45  ;;  %v4057_v45 = vor.u32 %v4487_v43, %v4056_v42 }
 0x14e   :  { %2573 = vmatpush.bf16.msrb.mxu2 %v3989_v1 }
 0x150   :  { %2548 = vmatpush.bf16.msrb.mxu0 %v3853_v53  ;;  %2532 = vmatpush.bf16.msra.mxu3 %v4065_v10  ;;  %v4040_v53 = vld [vmem:[#allocation8 + $0x1a0] sm:$0xf] }
 0x151   :  { %2561 = vmatpush.bf16.msrb.mxu1 %v3917_v28  ;;  %v4041_v29 = vor.u32 %v4483_v40, %v4040_v53 }
 0x152   :  { %2574 = vmatpush.bf16.msrb.mxu2 %v3981_v60 }
 0x154   :  { %2549 = vmatpush.bf16.msrb.mxu0 %v3845_v62  ;;  %2533 = vmatpush.bf16.msra.mxu3 %v4057_v45  ;;  %v4082_v62 = vld [vmem:[#allocation8 + $0x1f8] sm:$0xf0] }
 0x155   :  { %2562 = vmatpush.bf16.msrb.mxu1 %v3909_v2  ;;  %v4085_v1 = vor.u32 %v4492_v17, %v4082_v62  ;;  %v4077_v2 = vor.u32 %v4490_v31, %v4074_v22  ;;  %v4500_v31 = vld [vmem:[#allocation10 + $0x30] sm:$0xff] }
 0x156   :  { %2575 = vmatpush.bf16.msrb.mxu2 %v3973_v16  ;;  %v1664_v16 = vperm.slane %v4848_v34, 3  ;;  %v4508_v22 = vld [vmem:[#allocation10 + $0x70] sm:$0xff] }
 0x158   :  { %2550 = vmatpush.bf16.msrb.mxu0 %v3837_v14  ;;  %v1938_v39 = vpop.f32.mrf.mxu0  ;;  %2534 = vmatpush.bf16.msra.mxu3 %v4049_v51 }
 0x159   :  { %2563 = vmatpush.bf16.msrb.mxu1 %v3901_v38  ;;  %v1939_v41 = vadd.f32 %v1938_v39, %v1926_v35  ;;  %v1951_v0 = vpop.f32.mrf.mxu1  ;;  %v4053_v38 = vor.u32 %v4484_v32, %v4050_v15  ;;  %v4037_v35 = vor.u32 %v4480_v24, %v4034_v26  ;;  %v4029_v39 = vor.u32 %v4478_v36, %v4026_v37  ;;  %v4504_v32 = vld [vmem:[#allocation10 + $0x50] sm:$0xff]  ;;  %v4503_v15 = vld [vmem:[#allocation10 + $0x48] sm:$0xff] }
 0x15a   :  { %2576 = vmatpush.bf16.msrb.mxu2 %v3965_v23  ;;  %v4045_v23 = vor.u32 %v4482_v19, %v4042_v20  ;;  %v2635_v36 = vld [vmem:[%s4890_s6] sm:$0x1]  ;;  %s4702_s6 = smov [#allocation11]  }
 0x15b   :  { %4095 = vmatmul.msk.bf16.vlgmr.msrb.gmra.mxu0 %vm4834_vm2, %v4700_v11  ;;  %v1952_v44 = vadd.f32 %v1951_v0, %v1939_v41 }
 0x15c   :  { %4097 = vmatmul.msk.bf16.vlgmr.msrb.gmra.mxu1 %vm4838_vm3, %v4700_v11  ;;  %2535 = vmatpush.bf16.msra.mxu3 %v4041_v29 }
 0x160   :  { %v1964_v47 = vpop.f32.mrf.mxu2  ;;  %v1940_v52 = vpop.f32.mrf.mxu0  ;;  %2536 = vmatpush.bf16.msra.mxu3 %v4033_v58 }
 0x161   :  { %v1965_v8 = vadd.f32 %v1964_v47, %v1952_v44  ;;  %v1977_v48 = vpop.f32.mrf.mxu3  ;;  %v1953_v54 = vpop.f32.mrf.mxu1  ;;  %v2165_v52 = vld [vmem:[%s4888_s4] sm:$0x3] }
 0x162   :  { %v2487_v53 = vperm.slane %v2165_v52, 0 }
 0x163   :  { %v1978_v27 = vadd.f32 %v1977_v48, %v1965_v8 }
 0x164   :  { %2537 = vmatpush.bf16.msra.mxu3 %v4025_v63  ;;  %v4501_v63 = vld [vmem:[#allocation10 + $0x38] sm:$0xff] }
 0x165   :  { %vm2087_vm4 = vcmp.gt.f32.partialorder %v1978_v27, 0.0  ;;  %2732 = vmatpush.bf16.msra.mxu0 %v4501_v63 }
 0x166   :  { %vm4857_vm5 = vmpackc.low %vm2087_vm4, %vm2087_vm4 }
 0x167   :  { %4091 = vmatmul.msk.bf16.vlgmr.msra.gmra.mxu2 %vm4857_vm5, %v4700_v11 }
 0x168   :  { %v1966_v56 = vpop.f32.mrf.mxu2  ;;  %2582 = vmatpush.bf16.msrb.mxu3 %v4085_v1  ;;  %v4509_v1 = vld [vmem:[#allocation10 + $0x78] sm:$0xff] }
 0x169   :  { %v1979_v57 = vpop.f32.mrf.mxu3  ;;  %v2488_v56 = vperm.slane %v2165_v52, 1  ;;  %2745 = vmatpush.bf16.msra.mxu1 %v4509_v1  ;;  %2733 = vmatpush.bf16.msra.mxu0 %v4500_v31 }
 0x16c   :  { %2583 = vmatpush.bf16.msrb.mxu3 %v4077_v2  ;;  %v4499_v2 = vld [vmem:[#allocation10 + $0x28] sm:$0xff] }
 0x16d   :  { %2746 = vmatpush.bf16.msra.mxu1 %v4508_v22  ;;  %2734 = vmatpush.bf16.msra.mxu0 %v4499_v2 }
 0x170   :  { %2584 = vmatpush.bf16.msrb.mxu3 %v4069_v6 }
 0x171   :  { %2735 = vmatpush.bf16.msra.mxu0 %v4498_v4 }
 0x174   :  { %2585 = vmatpush.bf16.msrb.mxu3 %v4061_v12  ;;  %v4494_v12 = vld [vmem:[#allocation10] sm:$0xff] }
 0x175   :  { %2736 = vmatpush.bf16.msra.mxu0 %v4497_v5 }
 0x177   :  { %4099 = vmatmul.msk.bf16.vlgmr.msrb.gmra.mxu2 %vm4857_vm5, %v4700_v11 }
 0x178   :  { %v1990_v3 = vpop.f32.mrf.mxu0  ;;  %2586 = vmatpush.bf16.msrb.mxu3 %v4053_v38  ;;  %v4502_v38 = vld [vmem:[#allocation10 + $0x40] sm:$0xff] }
 0x179   :  { %v2003_v18 = vpop.f32.mrf.mxu1  ;;  %v1991_v33 = vadd.f32 %v1990_v3, %v1664_v16  ;;  %v4507_v3 = vld [vmem:[#allocation10 + $0x68] sm:$0xff] }
 0x17a   :  { %2747 = vmatpush.bf16.msra.mxu1 %v4507_v3 }
 0x17b   :  { %v2004_v10 = vadd.f32 %v2003_v18, %v1991_v33 }
 0x17c   :  { %2587 = vmatpush.bf16.msrb.mxu3 %v4045_v23 }
 0x180   :  { %v2016_v7 = vpop.f32.mrf.mxu2  ;;  %v1992_v13 = vpop.f32.mrf.mxu0  ;;  %2588 = vmatpush.bf16.msrb.mxu3 %v4037_v35 }
 0x181   :  { %v2029_v60 = vpop.f32.mrf.mxu3  ;;  %v2005_v14 = vpop.f32.mrf.mxu1  ;;  %v2017_v41 = vadd.f32 %v2016_v7, %v2004_v10  ;;  %v4496_v7 = vld [vmem:[#allocation10 + $0x10] sm:$0xff]  ;;  %v4506_v13 = vld [vmem:[#allocation10 + $0x60] sm:$0xff] }
 0x182   :  { %2737 = vmatpush.bf16.msra.mxu0 %v4496_v7  ;;  %2748 = vmatpush.bf16.msra.mxu1 %v4506_v13  ;;  %v4505_v14 = vld [vmem:[#allocation10 + $0x58] sm:$0xff] }
 0x183   :  { %v2030_v0 = vadd.f32 %v2029_v60, %v2017_v41 }
 0x184   :  { %2589 = vmatpush.bf16.msrb.mxu3 %v4029_v39  ;;  %v2765_v39 = vlaneseq }
 0x186   :  { %2738 = vmatpush.bf16.msra.mxu0 %v4495_v9  ;;  %2749 = vmatpush.bf16.msra.mxu1 %v4505_v14 }
 0x188   :  { %v2018_v21 = vpop.f32.mrf.mxu2 }
 0x189   :  { %v2031_v30 = vpop.f32.mrf.mxu3 }
 0x18a   :  { %2739 = vmatpush.bf16.msra.mxu0 %v4494_v12  ;;  %2750 = vmatpush.bf16.msra.mxu1 %v4504_v32 }
 0x18e   :  { %2751 = vmatpush.bf16.msra.mxu1 %v4503_v15 }
 0x192   :  { %2752 = vmatpush.bf16.msra.mxu1 %v4502_v38 }
 0x198   :  { %v2042_v34 = vpop.f32.mrf.mxu0 }
 0x199   :  { %v2055_v42 = vpop.f32.mrf.mxu1  ;;  %v2043_v43 = vadd.f32 %v2042_v34, %v2030_v0  ;;  %v4701_v0 = vmov 0.0  }
 0x19b   :  { %v2056_v44 = vadd.f32 %v2055_v42, %v2043_v43  ;;  %v2766_v42 = vand.u32 127, %v2765_v39 }
 0x19d   :  { %vm2767_vm13 = vcmp.lt.s32.totalorder %v2766_v42, 10 }
 0x1a0   :  { %v2068_v45 = vpop.f32.mrf.mxu2  ;;  %v2044_v48 = vpop.f32.mrf.mxu0 }
 0x1a1   :  { %v2069_v47 = vadd.f32 %v2068_v45, %v2056_v44  ;;  %v2081_v8 = vpop.f32.mrf.mxu3  ;;  %v2057_v49 = vpop.f32.mrf.mxu1 }
 0x1a3   :  { %v2082_v50 = vadd.f32 %v2081_v8, %v2069_v47 }
 0x1a5   :  { %vm2088_vm6 = vcmp.gt.f32.partialorder %v2082_v50, 0.0 }
 0x1a6   :  { %vm4092_vm7 = vmpackc.low %vm2088_vm6, %vm2088_vm6 }
 0x1a7   :  { %4093 = vmatmul.msk.bf16.vlgmr.msra.gmra.mxu3 %vm4092_vm7, %v4700_v11 }
 0x1a8   :  { %v2070_v51 = vpop.f32.mrf.mxu2 }
 0x1a9   :  { %v2083_v27 = vpop.f32.mrf.mxu3 }
 0x1b7   :  { %4101 = vmatmul.msk.bf16.vlgmr.msrb.gmra.mxu3 %vm4092_vm7, %v4700_v11 }
 0x1b8   :  { %v2500_v40 = vpop.f32.mrf.mxu0 }
 0x1b9   :  { %v2501_v54 = vadd.f32 %v2500_v40, %v2487_v53  ;;  %v2513_v28 = vpop.f32.mrf.mxu1 }
 0x1bb   :  { %v2514_v29 = vadd.f32 %v2513_v28, %v2501_v54 }
 0x1c0   :  { %v2502_v55 = vpop.f32.mrf.mxu0 }
 0x1c1   :  { %v2515_v46 = vpop.f32.mrf.mxu1 }
 0x1d8   :  { %v2552_v57 = vpop.f32.mrf.mxu0 }
 0x1d9   :  { %v2553_v58 = vadd.f32 %v2552_v57, %v2488_v56  ;;  %v2565_v59 = vpop.f32.mrf.mxu1 }
 0x1db   :  { %v2566_v61 = vadd.f32 %v2565_v59, %v2553_v58 }
 0x1e0   :  { %v2554_v17 = vpop.f32.mrf.mxu0 }
 0x1e1   :  { %v2567_v62 = vpop.f32.mrf.mxu1 }
 0x1ea   :  { %v2526_v18 = vpop.f32.mrf.mxu2 }
 0x1eb   :  { %v2527_v16 = vadd.f32 %v2526_v18, %v2514_v29 }
 0x1f2   :  { %v2528_v6 = vpop.f32.mrf.mxu2 }
 0x1fa   :  { %v2578_v25 = vpop.f32.mrf.mxu2 }
 0x1fb   :  { %v2579_v23 = vadd.f32 %v2578_v25, %v2566_v61 }
 0x202   :  { %v2580_v60 = vpop.f32.mrf.mxu2 }
 0x22a   :  { %v2539_v19 = vpop.f32.mrf.mxu3 }
 0x22b   :  { %v2540_v20 = vadd.f32 %v2539_v19, %v2527_v16 }
 0x22d   :  { %vm2595_vm8 = vcmp.gt.f32.partialorder %v2540_v20, 0.0 }
 0x22e   :  { %vm4168_vm9 = vmpackc.low %vm2595_vm8, %vm2595_vm8 }
 0x22f   :  { %4169 = vmatmul.msk.bf16.vlgmr.msra.gmra.mxu0 %vm4168_vm9, %v4700_v11 }
 0x232   :  { %v2541_v21 = vpop.f32.mrf.mxu3 }
 0x23a   :  { %v2591_v24 = vpop.f32.mrf.mxu3 }
 0x23b   :  { %v2592_v26 = vadd.f32 %v2591_v24, %v2579_v23 }
 0x23d   :  { %vm2596_vm10 = vcmp.gt.f32.partialorder %v2592_v26, 0.0 }
 0x23e   :  { %vm4170_vm11 = vmpackc.low %vm2596_vm10, %vm2596_vm10 }
 0x23f   :  { %4171 = vmatmul.msk.bf16.vlgmr.msra.gmra.mxu1 %vm4170_vm11, %v4700_v11  ;;  %v2763_v11 = vld [vmem:[%s4891_s7] sm:$0x1]  ;;  %s2788_s7 = sshll.u32 %s4702_s6, 4  ;;  %s2789_s7 = int_to_ptr.vmem [resolvable:$true] %s2788_s7 }
 0x242   :  { %v2593_v30 = vpop.f32.mrf.mxu3 }
 0x2ac   :  { %v2741_v33 = vpop.f32.mrf.mxu0 }
 0x2ad   :  { %v2742_v37 = vadd.f32 %v2741_v33, %v2635_v36 }
 0x2b4   :  { %v2743_v35 = vpop.f32.mrf.mxu0 }
 0x2bc   :  { %v2754_v10 = vpop.f32.mrf.mxu1 }
 0x2bd   :  { %v2755_v41 = vadd.f32 %v2754_v10, %v2742_v37 }
 0x2bf   :  { %vm2758_vm12 = vcmp.gt.f32.partialorder %v2755_v41, 0.0 }
 0x2c0   :  { %v4172_v34 = vsel %vm2758_vm12, 1.0, %v4701_v0 }
 0x2c1   :  { %v2761_v43 = vmul.f32 2.0, %v4172_v34 }
 0x2c3   :  { %v4173_v44 = vadd.f32 -1.0, %v2761_v43 }
 0x2c4   :  { %v2756_v45 = vpop.f32.mrf.mxu1 }
 0x2c5   :  { %v2764_v47 = vsub.f32 %v4173_v44, %v2763_v11 }
 0x2c7   :  { %v2768_v8 = vsel %vm2767_vm13, %v2764_v47, -1e+30 }
 0x2c8   :  { %v2770_v48 = vsel %vm2769_vm14, %v2768_v8, -inf }
 0x2c9   :  { %2771 = vmax.xlane.f32.xlu0 %v2770_v48 }
 0x33c   :  { %v2772_v49 = vpop.xlane.xlu0 %2771 }
 0x33d   :  { %v2773_v50 = vsub.f32 %v2768_v8, %v2772_v49 }
 0x33f   :  { %v2774_v51 = vmul.f32 1.442695, %v2773_v50 }
 0x341   :  { %4524 = vpow2.f32 %v2774_v51 }
 0x347   :  { %v4525_v27 = vpop.eup %4524 }
 0x348   :  { %v2776_v52 = vsel %vm2769_vm14, %v4525_v27, 0.0 }
 0x349   :  { %2777 = vadd.xlane.f32.xlu0 %v2776_v52 }
 0x3bc   :  { %v2778_v53 = vpop.xlane.xlu0 %2777 }
 0x3bd   :  { %4526 = vlog2.f32 %v2778_v53 }
 0x3c3   :  { %v4527_v40 = vpop.eup %4526 }
 0x3c4   :  { %v2780_v54 = vmul.f32 0.6931472, %v4527_v40 }
 0x3c6   :  { %v2781_v28 = vsub.f32 %v2773_v50, %v2780_v54 }
 0x3c8   :  { %2782 = vst [vmem:[#allocation11] sm:$0x1] %v2781_v28 }
 0x3c9   :  { %2793 = dma.vmem_to_hbm [thread:$0]  %s2789_s7, 16, %s2791_s16, [#allocation4]  }
 0x3ca   :  { %4687 = dma.done.wait [#allocation4], 16  }
 0x3cb   :  { %4688 = vsyncadd [#allocation4], 4294967280 }
 0x3cc   :  { %2798 = vsyncpa [#allocation3], 1 }
 0x3cd   :  { %2799 = vsyncpa [#allocation6], 1 }
 0x3ce   :  { %2800 = vsyncpa [#allocation9], 1 }
 0x3cf   :  { %2801 = vsyncpa [#allocation4], 1 }

</bundles_post_ra>
